<compile_context>
chip_gen: v7x
topology: tpu7x:2x2x1
jax: 0.10.0
libtpu: 0.0.40
codegen_flags: <defaults>
</compile_context>

<pallas_src>
import functools

import jax
import jax.numpy as jnp
from jax import lax
from jax.experimental import pallas as pl
from jax.experimental.pallas import tpu as pltpu


# ------------------------- Fused full-model kernel ---------------------------
def fused_lm_kernel(tokens_ref,              # SMEM (T*B,) int32 (scalar prefetch)
                    embed_ref,               # VMEM (V, E)
                    w_ih_ref,                # VMEM (E, 4H)  columns in [i,f,o,g]
                    b_lstm_ref,              # VMEM (1, 4H)  b_ih + b_hh, permuted
                    w_hh_ref,                # VMEM (H, 4H)  columns in [i,f,o,g]
                    w_fc_ref,                # VMEM (H, V)
                    b_fc_ref,                # VMEM (1, V)
                    out_ref,                 # VMEM (T*B, V) logits
                    x_sc,                    # VMEM scratch (T*B, E)
                    gx_sc,                   # VMEM scratch (T*B, 4H)
                    h_sc,                    # VMEM scratch (T*B, H)
                    *, seq_len, batch):
    T, B = seq_len, batch
    TB = T * B
    H = w_hh_ref.shape[0]

    # ---- 1. Embedding gather: token ids from SMEM, rows from the VMEM table.
    def gather_row(n, _):
        tok = tokens_ref[n]
        x_sc[pl.ds(n, 1), :] = embed_ref[pl.ds(tok, 1), :]
        return 0

    lax.fori_loop(0, TB, gather_row, 0)

    # ---- 2. Input projection: one large MXU matmul, off the serial path.
    gx_sc[...] = (
        jnp.dot(x_sc[...], w_ih_ref[...], preferred_element_type=jnp.float32)
        + b_lstm_ref[...]
    )

    # ---- 3. LSTM recurrence: only h_t @ W_hh^T sits on the serial path.
    # TODO(synk): stage W_hh in MXU weight registers once for all T steps via
    # pltpu.matmul_push_rhs / matmul_acc_lhs / matmul_pop instead of re-pushing
    # the 128x512 weight every step through jnp.dot.
    def step(t, carry):
        h, c = carry
        row = pl.multiple_of(t * B, B)
        gates = gx_sc[pl.ds(row, B), :] + jnp.dot(
            h, w_hh_ref[...], preferred_element_type=jnp.float32)
        sfo = jax.nn.sigmoid(gates[:, :3 * H])        # [i, f, o] in one pass
        g_g = jnp.tanh(gates[:, 3 * H:])
        i_g = sfo[:, 0:H]
        f_g = sfo[:, H:2 * H]
        o_g = sfo[:, 2 * H:3 * H]
        c_new = f_g * c + i_g * g_g
        h_new = o_g * jnp.tanh(c_new)
        h_sc[pl.ds(row, B), :] = h_new                # exact (8,128) tile store
        return (h_new, c_new)

    h0 = jnp.zeros((B, H), jnp.float32)
    c0 = jnp.zeros((B, H), jnp.float32)
    lax.fori_loop(0, T, step, (h0, c0))

    # ---- 4. fc epilogue on the VMEM-resident hidden slab.
    # dropout(0.5) is identity under inference semantics.
    # TODO(synk): training-mode dropout needs pltpu.prng_seed/prng_random_bits
    # masking with 2x rescale.
    out_ref[...] = (
        jnp.dot(h_sc[...], w_fc_ref[...], preferred_element_type=jnp.float32)
        + b_fc_ref[...]
    ).astype(out_ref.dtype)


# ---------------------------- Full model forward -----------------------------
def build_model_forward(tokens, kparams):
    # tokens: (T, B) int32, seq-first like PyTorch nn.LSTM (batch_first=False).
    T, B = tokens.shape
    TB = T * B
    V, E = kparams["embed"].shape
    H = kparams["w_hh_t"].shape[0]

    kernel = functools.partial(fused_lm_kernel, seq_len=T, batch=B)

    # TODO(synk): for production sizes, grid the recurrence over T chunks with
    # (h, c) carried in VMEM scratch, tile the fc over the vocab axis, and
    # re-derive all tile sizes against v7x's 64 MiB VMEM.  At demo shapes
    # everything (~1.5 MB) fits trivially in VMEM, so one resident call wins.
    return pl.pallas_call(
        kernel,
        out_shape=jax.ShapeDtypeStruct((TB, V), jnp.float32),
        grid_spec=pltpu.PrefetchScalarGridSpec(
            num_scalar_prefetch=1,          # tokens -> SMEM before the grid
            grid=(1,),                      # whole forward in one invocation
            in_specs=[
                pl.BlockSpec((V, E), lambda i, tok: (0, 0)),       # embed
                pl.BlockSpec((E, 4 * H), lambda i, tok: (0, 0)),   # w_ih_t
                pl.BlockSpec((1, 4 * H), lambda i, tok: (0, 0)),   # b_lstm
                pl.BlockSpec((H, 4 * H), lambda i, tok: (0, 0)),   # w_hh_t
                pl.BlockSpec((H, V), lambda i, tok: (0, 0)),       # w_fc_t
                pl.BlockSpec((1, V), lambda i, tok: (0, 0)),       # b_fc
            ],
            out_specs=pl.BlockSpec((TB, V), lambda i, tok: (0, 0)),
            scratch_shapes=[
                pltpu.VMEM((TB, E), jnp.float32),      # gathered embeddings
                pltpu.VMEM((TB, 4 * H), jnp.float32),  # input-projected gates
                pltpu.VMEM((TB, H), jnp.float32),      # hidden-state slab
            ],
        ),
        compiler_params=pltpu.CompilerParams(
            dimension_semantics=("arbitrary",),        # serial recurrence
        ),
    )(
        tokens.reshape(TB).astype(jnp.int32),
        kparams["embed"], kparams["w_ih_t"], kparams["b_lstm"],
        kparams["w_hh_t"], kparams["w_fc_t"], kparams["b_fc"],
    )


# ------------------------------- Parameters ----------------------------------
def init_params(key, vocab_size, embedding_dim, rnn_units):
    """Raw parameters in PyTorch layout / gate order [i, f, g, o]."""
    k = jax.random.split(key, 7)
    E, H, V = embedding_dim, rnn_units, vocab_size

    embed = jax.random.normal(k[0], (V, E), jnp.float32)   # nn.Embedding default

    def xavier(key, shape):
        fan_out, fan_in = shape
        bound = (6.0 / (fan_in + fan_out)) ** 0.5
        return jax.random.uniform(key, shape, jnp.float32, -bound, bound)

    w_ih = xavier(k[1], (4 * H, E))      # weight_ih_l0 (xavier_uniform_ in module)
    w_hh = xavier(k[2], (4 * H, H))      # weight_hh_l0 (xavier_uniform_ in module)
    bnd = 1.0 / (H ** 0.5)
    b_ih = jax.random.uniform(k[3], (4 * H,), jnp.float32, -bnd, bnd)
    b_hh = jax.random.uniform(k[4], (4 * H,), jnp.float32, -bnd, bnd)
    w_fc = jax.random.uniform(k[5], (V, H), jnp.float32, -bnd, bnd)   # nn.Linear
    b_fc = jax.random.uniform(k[6], (V,), jnp.float32, -bnd, bnd)
    return dict(embed=embed, w_ih=w_ih, w_hh=w_hh, b_ih=b_ih, b_hh=b_hh,
                w_fc=w_fc, b_fc=b_fc)


def _permute_ifgo_to_ifog(w):
    # PyTorch packs LSTM gates along dim 0 as [i, f, g, o]; re-pack as
    # [i, f, o, g] so the kernel does one sigmoid over 3H lanes + one tanh.
    i, f, g, o = jnp.split(w, 4, axis=0)
    return jnp.concatenate([i, f, o, g], axis=0)


def prepare_kernel_params(p):
    """Weight-prep-time layout changes: fold biases, permute gates, transpose."""
    w_ih = _permute_ifgo_to_ifog(p["w_ih"])
    w_hh = _permute_ifgo_to_ifog(p["w_hh"])
    b = _permute_ifgo_to_ifog(p["b_ih"] + p["b_hh"])
    return {
        "embed": p["embed"],
        "w_ih_t": jnp.transpose(w_ih),              # (E, 4H)
        "b_lstm": b.reshape(1, -1),                 # (1, 4H)
        "w_hh_t": jnp.transpose(w_hh),              # (H, 4H)
        "w_fc_t": jnp.transpose(p["w_fc"]),         # (H, V)
        "b_fc": p["b_fc"].reshape(1, -1),           # (1, V)
    }


# --------------------------- Pure-JAX reference -------------------------------
def reference_forward(tokens, p):
    T, B = tokens.shape
    H = p["w_hh"].shape[1]
    x = jnp.take(p["embed"], tokens, axis=0)                       # (T, B, E)
    w_ih_t, w_hh_t = p["w_ih"].T, p["w_hh"].T
    b = p["b_ih"] + p["b_hh"]

    def step(carry, x_t):
        h, c = carry
        gates = x_t @ w_ih_t + h @ w_hh_t + b
        i = jax.nn.sigmoid(gates[:, 0:H])
        f = jax.nn.sigmoid(gates[:, H:2 * H])
        g = jnp.tanh(gates[:, 2 * H:3 * H])
        o = jax.nn.sigmoid(gates[:, 3 * H:4 * H])
        c = f * c + i * g
        h = o * jnp.tanh(c)
        return (h, c), h

    h0 = jnp.zeros((B, H), jnp.float32)
    (_, _), hs = lax.scan(step, (h0, h0), x)
    return hs.reshape(T * B, H) @ p["w_fc"].T + p["b_fc"]


if __name__ == "__main__":
    # Small TPU-friendly shapes consistent with the module semantics:
    # H=128/B=8 keep gate slices lane-aligned and all stores lane-dense.
    vocab_size, embedding_dim, rnn_units = 512, 128, 128
    seq_len, batch = 8, 8

    key = jax.random.PRNGKey(0)
    k_tok, k_par = jax.random.split(key)

    tokens = jax.random.randint(k_tok, (seq_len, batch), 0, vocab_size, jnp.int32)
    params = init_params(k_par, vocab_size, embedding_dim, rnn_units)
    kparams = prepare_kernel_params(params)

    logits = jax.jit(build_model_forward)(tokens, kparams)
    logits = jax.block_until_ready(logits)

    assert logits.shape == (seq_len * batch, vocab_size), logits.shape
    assert bool(jnp.all(jnp.isfinite(logits)))

    # Loose-tolerance check against a pure-JAX reference (MXU precision noise).
    ref = reference_forward(tokens, params)
    max_err = float(jnp.max(jnp.abs(logits - ref)))
    assert max_err < 5e-2, f"max abs err vs reference: {max_err}"

    print("KERNEL_OK")
</pallas_src>

<mosaic_0001>
module attributes {stable_mosaic.version = 11 : i64} {
  func.func @fused_lm_kernel(%arg0: i32, %arg1: memref<64xi32, #tpu.memory_space<smem>>, %arg2: memref<512x128xf32, #tpu.memory_space<vmem>>, %arg3: memref<128x512xf32, #tpu.memory_space<vmem>>, %arg4: memref<1x512xf32, #tpu.memory_space<vmem>>, %arg5: memref<128x512xf32, #tpu.memory_space<vmem>>, %arg6: memref<128x512xf32, #tpu.memory_space<vmem>>, %arg7: memref<1x512xf32, #tpu.memory_space<vmem>>, %arg8: memref<64x512xf32, #tpu.memory_space<vmem>>, %arg9: memref<64x128xf32, #tpu.memory_space<vmem>>, %arg10: memref<64x512xf32, #tpu.memory_space<vmem>>, %arg11: memref<64x128xf32, #tpu.memory_space<vmem>>) attributes {dimension_semantics = [#tpu.dimension_semantics<arbitrary>], iteration_bounds = array<i64: 1>, scalar_prefetch = 1 : i64, scratch_operands = 3 : i64, tpu.core_type = #tpu.core_type<tc>, window_params = [{pipeline_mode = #tpu.pipeline_mode<synchronous>, transform_indices = @transform_0, window_bounds = array<i64: 512, 128>}, {pipeline_mode = #tpu.pipeline_mode<synchronous>, transform_indices = @transform_1, window_bounds = array<i64: 128, 512>}, {pipeline_mode = #tpu.pipeline_mode<synchronous>, transform_indices = @transform_2, window_bounds = array<i64: 1, 512>}, {pipeline_mode = #tpu.pipeline_mode<synchronous>, transform_indices = @transform_3, window_bounds = array<i64: 128, 512>}, {pipeline_mode = #tpu.pipeline_mode<synchronous>, transform_indices = @transform_4, window_bounds = array<i64: 128, 512>}, {pipeline_mode = #tpu.pipeline_mode<synchronous>, transform_indices = @transform_5, window_bounds = array<i64: 1, 512>}, {pipeline_mode = #tpu.pipeline_mode<synchronous>, transform_indices = @transform_6, window_bounds = array<i64: 64, 512>}]} {
    %c0_i32 = arith.constant 0 : i32
    %c64_i32 = arith.constant 64 : i32
    %0 = arith.addi %c0_i32, %c64_i32 : i32
    %c1_i32 = arith.constant 1 : i32
    scf.for %arg12 = %c0_i32 to %0 step %c1_i32  : i32 {
      %19 = arith.index_cast %arg12 : i32 to index
      %20 = memref.load %arg1[%19] : memref<64xi32, #tpu.memory_space<smem>>
      %21 = arith.index_cast %20 : i32 to index
      %c0_22 = arith.constant 0 : index
      %22 = vector.load %arg2[%21, %c0_22] : memref<512x128xf32, #tpu.memory_space<vmem>>, vector<1x128xf32>
      %23 = arith.index_cast %arg12 : i32 to index
      %c0_23 = arith.constant 0 : index
      %24 = vector.load %arg9[%23, %c0_23] : memref<64x128xf32, #tpu.memory_space<vmem>>, vector<1x128xf32>
      tpu.vector_store %arg9[%23, %c0_23], %22 {strides = array<i32>} : memref<64x128xf32, #tpu.memory_space<vmem>>, vector<1x128xf32>,
    }
    %c64_i32_0 = arith.constant 64 : i32
    %c0 = arith.constant 0 : index
    %c0_1 = arith.constant 0 : index
    %1 = vector.load %arg9[%c0, %c0_1] : memref<64x128xf32, #tpu.memory_space<vmem>>, vector<64x128xf32>
    %c0_2 = arith.constant 0 : index
    %c0_3 = arith.constant 0 : index
    %2 = vector.load %arg3[%c0_2, %c0_3] : memref<128x512xf32, #tpu.memory_space<vmem>>, vector<128x512xf32>
    %cst = arith.constant dense<0.000000e+00> : vector<64x512xf32>
    %3 = tpu.matmul %1, %2, %cst {dimension_numbers = #tpu.dot_dimension_numbers<[1], [0], [0], [1], [0, 0, 1, 1], [], []>} : vector<64x128xf32>, vector<128x512xf32>, vector<64x512xf32> -> vector<64x512xf32>
    %c0_4 = arith.constant 0 : index
    %c0_5 = arith.constant 0 : index
    %4 = vector.load %arg4[%c0_4, %c0_5] : memref<1x512xf32, #tpu.memory_space<vmem>>, vector<1x512xf32>
    %5 = vector.broadcast %4 : vector<1x512xf32> to vector<64x512xf32>
    %6 = arith.addf %3, %5 : vector<64x512xf32>
    %c0_6 = arith.constant 0 : index
    %c0_7 = arith.constant 0 : index
    %7 = vector.load %arg10[%c0_6, %c0_7] : memref<64x512xf32, #tpu.memory_space<vmem>>, vector<64x512xf32>
    tpu.vector_store %arg10[%c0_6, %c0_7], %6 {strides = array<i32>} : memref<64x512xf32, #tpu.memory_space<vmem>>, vector<64x512xf32>,
    %cst_8 = arith.constant 0.000000e+00 : f32
    %8 = vector.broadcast %cst_8 : f32 to vector<8x128xf32>
    %cst_9 = arith.constant 0.000000e+00 : f32
    %9 = vector.broadcast %cst_9 : f32 to vector<8x128xf32>
    %c0_i32_10 = arith.constant 0 : i32
    %c8_i32 = arith.constant 8 : i32
    %10 = arith.addi %c0_i32_10, %c8_i32 : i32
    %c1_i32_11 = arith.constant 1 : i32
    %11:2 = scf.for %arg12 = %c0_i32_10 to %10 step %c1_i32_11 iter_args(%arg13 = %8, %arg14 = %9) -> (vector<8x128xf32>, vector<8x128xf32>)  : i32 {
      %c8_i32_22 = arith.constant 8 : i32
      %19 = arith.muli %arg12, %c8_i32_22 : i32
      %20 = tpu.assume_multiple %19, 8 : i32
      %21 = arith.index_cast %20 : i32 to index
      %c0_23 = arith.constant 0 : index
      %22 = vector.load %arg10[%21, %c0_23] : memref<64x512xf32, #tpu.memory_space<vmem>>, vector<8x512xf32>
      %c0_24 = arith.constant 0 : index
      %c0_25 = arith.constant 0 : index
      %23 = vector.load %arg5[%c0_24, %c0_25] : memref<128x512xf32, #tpu.memory_space<vmem>>, vector<128x512xf32>
      %cst_26 = arith.constant dense<0.000000e+00> : vector<8x512xf32>
      %24 = tpu.matmul %arg13, %23, %cst_26 {dimension_numbers = #tpu.dot_dimension_numbers<[1], [0], [0], [1], [0, 0, 1, 1], [], []>} : vector<8x128xf32>, vector<128x512xf32>, vector<8x512xf32> -> vector<8x512xf32>
      %25 = arith.addf %22, %24 : vector<8x512xf32>
      %26 = vector.extract_strided_slice %25 {offsets = [0, 0], sizes = [8, 384], strides = [1, 1]} : vector<8x512xf32> to vector<8x384xf32>
      %27 = arith.negf %26 : vector<8x384xf32>
      %28 = math.exp %27 : vector<8x384xf32>
      %cst_27 = arith.constant 1.000000e+00 : f32
      %29 = vector.broadcast %cst_27 : f32 to vector<8x384xf32>
      %30 = arith.addf %29, %28 : vector<8x384xf32>
      %31 = arith.divf %29, %30 : vector<8x384xf32>
      %32 = vector.extract_strided_slice %25 {offsets = [0, 384], sizes = [8, 128], strides = [1, 1]} : vector<8x512xf32> to vector<8x128xf32>
      %33 = math.tanh %32 : vector<8x128xf32>
      %34 = vector.extract_strided_slice %31 {offsets = [0, 0], sizes = [8, 128], strides = [1, 1]} : vector<8x384xf32> to vector<8x128xf32>
      %35 = vector.extract_strided_slice %31 {offsets = [0, 128], sizes = [8, 128], strides = [1, 1]} : vector<8x384xf32> to vector<8x128xf32>
      %36 = vector.extract_strided_slice %31 {offsets = [0, 256], sizes = [8, 128], strides = [1, 1]} : vector<8x384xf32> to vector<8x128xf32>
      %37 = arith.mulf %35, %arg14 : vector<8x128xf32>
      %38 = arith.mulf %34, %33 : vector<8x128xf32>
      %39 = arith.addf %37, %38 : vector<8x128xf32>
      %40 = math.tanh %39 : vector<8x128xf32>
      %41 = arith.mulf %36, %40 : vector<8x128xf32>
      %42 = arith.index_cast %20 : i32 to index
      %c0_28 = arith.constant 0 : index
      %43 = vector.load %arg11[%42, %c0_28] : memref<64x128xf32, #tpu.memory_space<vmem>>, vector<8x128xf32>
      tpu.vector_store %arg11[%42, %c0_28], %41 {strides = array<i32>} : memref<64x128xf32, #tpu.memory_space<vmem>>, vector<8x128xf32>,
      scf.yield %41, %39 : vector<8x128xf32>, vector<8x128xf32>
    }
    %c8_i32_12 = arith.constant 8 : i32
    %c0_13 = arith.constant 0 : index
    %c0_14 = arith.constant 0 : index
    %12 = vector.load %arg11[%c0_13, %c0_14] : memref<64x128xf32, #tpu.memory_space<vmem>>, vector<64x128xf32>
    %c0_15 = arith.constant 0 : index
    %c0_16 = arith.constant 0 : index
    %13 = vector.load %arg6[%c0_15, %c0_16] : memref<128x512xf32, #tpu.memory_space<vmem>>, vector<128x512xf32>
    %cst_17 = arith.constant dense<0.000000e+00> : vector<64x512xf32>
    %14 = tpu.matmul %12, %13, %cst_17 {dimension_numbers = #tpu.dot_dimension_numbers<[1], [0], [0], [1], [0, 0, 1, 1], [], []>} : vector<64x128xf32>, vector<128x512xf32>, vector<64x512xf32> -> vector<64x512xf32>
    %c0_18 = arith.constant 0 : index
    %c0_19 = arith.constant 0 : index
    %15 = vector.load %arg7[%c0_18, %c0_19] : memref<1x512xf32, #tpu.memory_space<vmem>>, vector<1x512xf32>
    %16 = vector.broadcast %15 : vector<1x512xf32> to vector<64x512xf32>
    %17 = arith.addf %14, %16 : vector<64x512xf32>
    %c0_20 = arith.constant 0 : index
    %c0_21 = arith.constant 0 : index
    %18 = vector.load %arg8[%c0_20, %c0_21] : memref<64x512xf32, #tpu.memory_space<vmem>>, vector<64x512xf32>
    tpu.vector_store %arg8[%c0_20, %c0_21], %17 {strides = array<i32>} : memref<64x512xf32, #tpu.memory_space<vmem>>, vector<64x512xf32>,
    return
  }
  func.func @transform_0(%arg0: i32, %arg1: memref<64xi32, #tpu.memory_space<smem>>) -> (i32, i32) {
    %c0_i32 = arith.constant 0 : i32
    %c0_i32_0 = arith.constant 0 : i32
    %c0_i32_1 = arith.constant 0 : i32
    return %c0_i32, %c0_i32_0 : i32, i32
  }
  func.func @transform_1(%arg0: i32, %arg1: memref<64xi32, #tpu.memory_space<smem>>) -> (i32, i32) {
    %c0_i32 = arith.constant 0 : i32
    %c0_i32_0 = arith.constant 0 : i32
    %c0_i32_1 = arith.constant 0 : i32
    return %c0_i32, %c0_i32_0 : i32, i32
  }
  func.func @transform_2(%arg0: i32, %arg1: memref<64xi32, #tpu.memory_space<smem>>) -> (i32, i32) {
    %c0_i32 = arith.constant 0 : i32
    %c0_i32_0 = arith.constant 0 : i32
    %c0_i32_1 = arith.constant 0 : i32
    return %c0_i32, %c0_i32_0 : i32, i32
  }
  func.func @transform_3(%arg0: i32, %arg1: memref<64xi32, #tpu.memory_space<smem>>) -> (i32, i32) {
    %c0_i32 = arith.constant 0 : i32
    %c0_i32_0 = arith.constant 0 : i32
    %c0_i32_1 = arith.constant 0 : i32
    return %c0_i32, %c0_i32_0 : i32, i32
  }
  func.func @transform_4(%arg0: i32, %arg1: memref<64xi32, #tpu.memory_space<smem>>) -> (i32, i32) {
    %c0_i32 = arith.constant 0 : i32
    %c0_i32_0 = arith.constant 0 : i32
    %c0_i32_1 = arith.constant 0 : i32
    return %c0_i32, %c0_i32_0 : i32, i32
  }
  func.func @transform_5(%arg0: i32, %arg1: memref<64xi32, #tpu.memory_space<smem>>) -> (i32, i32) {
    %c0_i32 = arith.constant 0 : i32
    %c0_i32_0 = arith.constant 0 : i32
    %c0_i32_1 = arith.constant 0 : i32
    return %c0_i32, %c0_i32_0 : i32, i32
  }
  func.func @transform_6(%arg0: i32, %arg1: memref<64xi32, #tpu.memory_space<smem>>) -> (i32, i32) {
    %c0_i32 = arith.constant 0 : i32
    %c0_i32_0 = arith.constant 0 : i32
    %c0_i32_1 = arith.constant 0 : i32
    return %c0_i32, %c0_i32_0 : i32, i32
  }
}

</mosaic_0001>

<bundles_post_ra>
// kernel: build_model_forward.1
= control target key start
LH: loop header
LB: loop body
LE: loop exit
PB: predicated region body
PF: predicated region fallthrough
CT: control target
= control target key end

     0   :  { %s1823_s0 = inlined_call_operand.vmem [shape: s32[64], index: 0, kind: input, shape index: {}]   ;;  %s1824_s1 = inlined_call_operand.hbm [shape: f32[512,128], index: 1, kind: input, shape index: {}]   ;;  %s1825_s2 = inlined_call_operand.hbm [shape: f32[128,512], index: 2, kind: input, shape index: {}]   ;;  %s1826_s3 = inlined_call_operand.vmem [shape: f32[1,512], index: 3, kind: input, shape index: {}]   ;;  %s1827_s4 = inlined_call_operand.hbm [shape: f32[128,512], index: 4, kind: input, shape index: {}]   ;;  %s1828_s5 = inlined_call_operand.hbm [shape: f32[128,512], index: 5, kind: input, shape index: {}]   ;;  %s1829_s6 = inlined_call_operand.vmem [shape: f32[1,512], index: 6, kind: input, shape index: {}]   ;;  %s1830_s7 = inlined_call_operand.hbm [shape: f32[64,512], index: 7, kind: output, shape index: {}]  }
   0x1   :  { %s12_s26 = sshll.u32 %s1823_s0, 4  ;;  %s13_s26 = int_to_ptr.vmem [resolvable:$true] %s12_s26 }
   0x2   :  { %s1355_s27 = scalar_lea.vmem %s13_s26, 16  ;;  %p1360_p1 = scmp.lt.s32.totalorder %s13_s26, %s13_s26 }
   0x3   :  { %p1356_p0 = scmp.ne.s32.totalorder %s13_s26, %s1355_s27  ;;  %p1361_p2 = scmp.lt.s32.totalorder %s1355_s27, %s1355_s27 }
   0x5   :  { %p1362_p3 = por %p1361_p2, %p1360_p1 }
   0x7   :  { %p1363_p4 = pnand %p1362_p3, %p1356_p0 }
   0x9   :  { %1366 = shalt.err (!%p1363_p4)  }
   0xa   :  { %s1519_s28 = smov [#allocation6]  }
   0xb   :  { %15 = dma.vmem_to_smem %s13_s26, 16, %s1519_s28, [#allocation5] }
   0xc   :  { %1493 = dma.done.wait [#allocation5], 16 }
   0xd   :  { %1494 = vsyncadd [#allocation5], 4294967280 }
   0xe   :  { %17 = sfence }
   0xf   :  { %18 = vsyncpa [#allocation8], 0 }
  0x10   :  { %19 = vsyncpa [#allocation11], 0 }
  0x11   :  { %20 = vsyncpa [#allocation14], 0 }
  0x12   :  { %21 = vsyncpa [#allocation9], 0  ;;  %s1520_s29 = smov [#allocation10]   ;;  %s1367_s9 = scalar_lea.hbm %s1825_s2, 8192 }
  0x13   :  { %s39_s30 = sshll.u32 %s1520_s29, 4  ;;  %p1368_p5 = scmp.ne.s32.totalorder %s1825_s2, %s1367_s9  ;;  %s40_s30 = int_to_ptr.vmem [resolvable:$true] %s39_s30 }
  0x14   :  { %p1371_p6 = scmp.lt.u32.totalorder %s1367_s9, %s1825_s2 }
  0x16   :  { %p1373_p7 = pnand %p1371_p6, %p1368_p5 }
  0x18   :  { %1376 = shalt.err (!%p1373_p7)
}
  0x19   :  { %s1377_s14 = scalar_lea.vmem %s40_s30, 8192  ;;  %p1382_p9 = scmp.lt.s32.totalorder %s40_s30, %s40_s30 }
  0x1a   :  { %p1378_p8 = scmp.ne.s32.totalorder %s40_s30, %s1377_s14  ;;  %p1383_p10 = scmp.lt.s32.totalorder %s1377_s14, %s1377_s14 }
  0x1c   :  { %p1384_p11 = por %p1383_p10, %p1382_p9 }
  0x1e   :  { %p1385_p12 = pnand %p1384_p11, %p1378_p8 }
  0x20   :  { %1388 = shalt.err (!%p1385_p12)
}
  0x21   :  { %s1521_s15 = smov 512   ;;  %s1522_s16 = smov 32  }
  0x22   :  { %45 = dma.hbm_to_vmem [thread:$0]  %s1825_s2, 8192, %s40_s30, [#allocation11], %s1521_s15, %s1521_s15, %s1522_s16  }
  0x23   :  { %s1523_s19 = smov [#allocation7]   ;;  %s1389_s23 = scalar_lea.hbm %s1824_s1, 8192 }
  0x24   :  { %s27_s20 = sshll.u32 %s1523_s19, 4  ;;  %p1390_p13 = scmp.ne.s32.totalorder %s1824_s1, %s1389_s23  ;;  %s28_s20 = int_to_ptr.vmem [resolvable:$true] %s27_s20 }
  0x25   :  { %p1393_p0 = scmp.lt.u32.totalorder %s1389_s23, %s1824_s1 }
  0x27   :  { %p1395_p1 = pnand %p1393_p0, %p1390_p13 }
  0x29   :  { %1398 = shalt.err (!%p1395_p1)
}
  0x2a   :  { %s1399_s28 = scalar_lea.vmem %s28_s20, 8192  ;;  %p1404_p3 = scmp.lt.s32.totalorder %s28_s20, %s28_s20 }
  0x2b   :  { %p1400_p2 = scmp.ne.s32.totalorder %s28_s20, %s1399_s28  ;;  %p1405_p4 = scmp.lt.s32.totalorder %s1399_s28, %s1399_s28 }
  0x2d   :  { %p1406_p5 = por %p1405_p4, %p1404_p3 }
  0x2f   :  { %p1407_p6 = pnand %p1406_p5, %p1400_p2 }
  0x31   :  { %1410 = shalt.err (!%p1407_p6)
}
  0x32   :  { %s1524_s2 = smov 128   ;;  %s1525_s29 = smov 8  }
  0x33   :  { %33 = dma.hbm_to_vmem [thread:$0]  %s1824_s1, 8192, %s28_s20, [#allocation8], %s1524_s2, %s1524_s2, %s1525_s29  }
  0x34   :  { %s1526_s8 = smov [#allocation12]   ;;  %s1527_s10 = smov [#allocation13]  }
  0x35   :  { %s53_s9 = sshll.u32 %s1526_s8, 4  ;;  %s65_s11 = sshll.u32 %s1527_s10, 4  ;;  %s54_s9 = int_to_ptr.vmem [resolvable:$true] %s53_s9  ;;  %s1601_s11 = int_to_ptr.vmem [resolvable:$true] %s65_s11 }
  0x36   :  { %s1411_s14 = scalar_lea.hbm %s1827_s4, 8192 }
  0x37   :  { %p1412_p7 = scmp.ne.s32.totalorder %s1827_s4, %s1411_s14  ;;  %p1415_p8 = scmp.lt.u32.totalorder %s1411_s14, %s1827_s4 }
  0x39   :  { %p1417_p9 = pnand %p1415_p8, %p1412_p7 }
  0x3b   :  { %1420 = shalt.err (!%p1417_p9)
}
  0x3c   :  { %s1421_s1 = scalar_lea.vmem %s54_s9, 8192  ;;  %p1426_p11 = scmp.lt.s32.totalorder %s54_s9, %s54_s9 }
  0x3d   :  { %p1422_p10 = scmp.ne.s32.totalorder %s54_s9, %s1421_s1  ;;  %p1427_p12 = scmp.lt.s32.totalorder %s1421_s1, %s1421_s1 }
  0x3f   :  { %p1428_p13 = por %p1427_p12, %p1426_p11 }
  0x41   :  { %p1429_p0 = pnand %p1428_p13, %p1422_p10 }
  0x43   :  { %1432 = shalt.err (!%p1429_p0)
}
  0x44   :  { %59 = dma.hbm_to_vmem [thread:$0]  %s1827_s4, 8192, %s54_s9, [#allocation11], %s1521_s15, %s1521_s15, %s1522_s16  }
  0x45   :  { %s1433_s25 = scalar_lea.hbm %s1828_s5, 8192 }
  0x46   :  { %p1434_p1 = scmp.ne.s32.totalorder %s1828_s5, %s1433_s25  ;;  %p1437_p2 = scmp.lt.u32.totalorder %s1433_s25, %s1828_s5 }
  0x48   :  { %p1439_p3 = pnand %p1437_p2, %p1434_p1 }
  0x4a   :  { %1442 = shalt.err (!%p1439_p3)
}
  0x4b   :  { %s1443_s29 = scalar_lea.vmem %s1601_s11, 8192  ;;  %p1448_p5 = scmp.lt.s32.totalorder %s1601_s11, %s1601_s11 }
  0x4c   :  { %p1444_p4 = scmp.ne.s32.totalorder %s1601_s11, %s1443_s29  ;;  %p1449_p6 = scmp.lt.s32.totalorder %s1443_s29, %s1443_s29 }
  0x4e   :  { %p1450_p7 = por %p1449_p6, %p1448_p5 }
  0x50   :  { %p1451_p8 = pnand %p1450_p7, %p1444_p4 }
  0x52   :  { %1454 = shalt.err (!%p1451_p8)
}
  0x53   :  { %71 = dma.hbm_to_vmem [thread:$0]  %s1828_s5, 8192, %s1601_s11, [#allocation14], %s1521_s15, %s1521_s15, %s1522_s16  }
  0x54   :  { %1495 = dma.done.wait [#allocation8], 8192  }
  0x55   :  { %1496 = vsyncadd [#allocation8], 4294959104 }
  0x56   :  { %1497 = dma.done.wait [#allocation11], 16384  }
  0x57   :  { %1498 = vsyncadd [#allocation11], 4294950912 }
  0x58   :  { %1499 = dma.done.wait [#allocation14], 8192  }
  0x59   :  { %1500 = vsyncadd [#allocation14], 4294959104  ;;  %s1503_s0 = smov 0  }
  0x5a LB: > { %s92_s8 = sld [smem:[#allocation6 + %s1505_s0]]  ;;  %s95_s10 = scalar_lea.vmem [#allocation2], %s1505_s0  ;;  %s1505_s0 = sphi %s1503_s0, %s91_s0  }
  0x5b   : > { %s91_s0 = sadd.s32 1, %s1505_s0  }
  0x5c   : > { %p88_p9 = scmp.ge.s32.totalorder %s91_s0, 64  }
  0x5d   :  { %v106_v1 = vld [vmem:[#allocation10 + $0x8] sm:$0xff] (%p88_p9)  ;;  %v108_v3 = vld [vmem:[#allocation10 + $0x18] sm:$0xff] (%p88_p9)  ;;  %v105_v6 = vld [vmem:[#allocation10] sm:$0xff] (%p88_p9)  ;;  %v1528_v8 = vmov (%p88_p9), 0.0  }
  0x5e   :  { %90 = sbr.rel (!%p88_p9) target bundleno = 90 (0x5a), region = 78  ;;  %v110_v2 = vld [vmem:[#allocation10 + $0x28] sm:$0xff] (%p88_p9)  ;;  %v112_v5 = vld [vmem:[#allocation10 + $0x38] sm:$0xff] (%p88_p9)  ;;  %v109_v7 = vld [vmem:[#allocation10 + $0x20] sm:$0xff] (%p88_p9)  ;;  %255 = vmatprep.mubr.f32.mxu0 (%p88_p9), %v1528_v8  ;;  %368 = vmatprep.mubr.f32.mxu1 (%p88_p9), %v1528_v8 }
  0x5f   :  { %v1103_v4 = vpack.c.bf16 (%p88_p9), %v110_v2, %v106_v1  ;;  %v1135_v9 = vpack.c.bf16 (%p88_p9), %v112_v5, %v108_v3  ;;  %v1105_v10 = vpack.c.bf16 (%p88_p9), %v109_v7, %v105_v6  ;;  %v107_v11 = vld [vmem:[#allocation10 + $0x10] sm:$0xff] (%p88_p9)  ;;  %v114_v13 = vld [vmem:[#allocation10 + $0x48] sm:$0xff] (%p88_p9)  ;;  %v116_v16 = vld [vmem:[#allocation10 + $0x58] sm:$0xff] (%p88_p9) }
  0x60   : > { %s93_s9 = scalar_lea.vmem [#allocation7], %s92_s8  ;;  %v111_v12 = vld [vmem:[#allocation10 + $0x30] sm:$0xff] (%p88_p9)  ;;  %v118_v15 = vld [vmem:[#allocation10 + $0x68] sm:$0xff] (%p88_p9)  ;;  %v120_v17 = vld [vmem:[#allocation10 + $0x78] sm:$0xff] (%p88_p9) }
  0x61   : > { %v94_v0 = vld [vmem:[%s93_s9] sm:$0x1]  ;;  %1104 = vmatprep.subr.bf16.mxu0 (%p88_p9), %v1103_v4  ;;  %v1137_v14 = vpack.c.bf16 (%p88_p9), %v111_v12, %v107_v11  ;;  %1136 = vmatprep.subr.bf16.mxu1 (%p88_p9), %v1135_v9  ;;  %v1107_v18 = vpack.c.bf16 (%p88_p9), %v118_v15, %v114_v13  ;;  %v1139_v19 = vpack.c.bf16 (%p88_p9), %v120_v17, %v116_v16  ;;  %v115_v22 = vld [vmem:[#allocation10 + $0x50] sm:$0xff] (%p88_p9)  ;;  %v122_v25 = vld [vmem:[#allocation10 + $0x88] sm:$0xff] (%p88_p9) }
  0x62   : > { %96 = vst [vmem:[%s95_s10] sm:$0x1] %v94_v0  ;;  %1106 = vmatpush1.bf16.msra.mxu0 (%p88_p9), %v1105_v10  ;;  %v113_v20 = vld [vmem:[#allocation10 + $0x40] sm:$0xff] (%p88_p9)  ;;  %v119_v24 = vld [vmem:[#allocation10 + $0x70] sm:$0xff] (%p88_p9)  ;;  %v126_v26 = vld [vmem:[#allocation10 + $0xa8] sm:$0xff] (%p88_p9) }
  0x63   :  { %v117_v21 = vld [vmem:[#allocation10 + $0x60] sm:$0xff] (%p88_p9)  ;;  %1138 = vmatpush1.bf16.msra.mxu1 (%p88_p9), %v1137_v14  ;;  %1108 = vmatprep.subr.bf16.mxu0 (%p88_p9), %v1107_v18  ;;  %v1141_v27 = vpack.c.bf16 (%p88_p9), %v119_v24, %v115_v22  ;;  %v1111_v28 = vpack.c.bf16 (%p88_p9), %v126_v26, %v122_v25  ;;  %v124_v29 = vld [vmem:[#allocation10 + $0x98] sm:$0xff] (%p88_p9)  ;;  %v123_v34 = vld [vmem:[#allocation10 + $0x90] sm:$0xff] (%p88_p9) }
  0x64   :  { %v1109_v23 = vpack.c.bf16 (%p88_p9), %v117_v21, %v113_v20  ;;  %1140 = vmatprep.subr.bf16.mxu1 (%p88_p9), %v1139_v19  ;;  %v128_v30 = vld [vmem:[#allocation10 + $0xb8] sm:$0xff] (%p88_p9)  ;;  %v121_v31 = vld [vmem:[#allocation10 + $0x80] sm:$0xff] (%p88_p9)  ;;  %v127_v35 = vld [vmem:[#allocation10 + $0xb0] sm:$0xff] (%p88_p9) }
  0x65   :  { %v1143_v32 = vpack.c.bf16 %v128_v30, %v124_v29  ;;  %v125_v33 = vld [vmem:[#allocation10 + $0xa0] sm:$0xff]  ;;  %v130_v37 = vld [vmem:[#allocation10 + $0xc8] sm:$0xff]  ;;  %v132_v39 = vld [vmem:[#allocation10 + $0xd8] sm:$0xff]  ;;  %v1145_v40 = vpack.c.bf16 %v127_v35, %v123_v34 }
  0x66   :  { %1110 = vmatpush1.bf16.msra.mxu0 %v1109_v23  ;;  %v1113_v36 = vpack.c.bf16 %v125_v33, %v121_v31  ;;  %v134_v38 = vld [vmem:[#allocation10 + $0xe8] sm:$0xff]  ;;  %v136_v42 = vld [vmem:[#allocation10 + $0xf8] sm:$0xff]  ;;  %v129_v43 = vld [vmem:[#allocation10 + $0xc0] sm:$0xff] }
  0x67   :  { %1142 = vmatpush1.bf16.msra.mxu1 %v1141_v27  ;;  %1112 = vmatprep.subr.bf16.mxu0 %v1111_v28  ;;  %v1115_v41 = vpack.c.bf16 %v134_v38, %v130_v37  ;;  %v133_v44 = vld [vmem:[#allocation10 + $0xe0] sm:$0xff]  ;;  %v1147_v45 = vpack.c.bf16 %v136_v42, %v132_v39  ;;  %v131_v46 = vld [vmem:[#allocation10 + $0xd0] sm:$0xff]  ;;  %v138_v48 = vld [vmem:[#allocation10 + $0x108] sm:$0xff] }
  0x68   :  { %1144 = vmatprep.subr.bf16.mxu1 %v1143_v32  ;;  %v135_v47 = vld [vmem:[#allocation10 + $0xf0] sm:$0xff]  ;;  %v142_v49 = vld [vmem:[#allocation10 + $0x128] sm:$0xff]  ;;  %v140_v50 = vld [vmem:[#allocation10 + $0x118] sm:$0xff]  ;;  %v1117_v52 = vpack.c.bf16 %v133_v44, %v129_v43  ;;  %v171_v43 = vlaneseq }
  0x69   :  { %v144_v51 = vld [vmem:[#allocation10 + $0x138] sm:$0xff]  ;;  %v1149_v53 = vpack.c.bf16 %v135_v47, %v131_v46  ;;  %v1119_v54 = vpack.c.bf16 %v142_v49, %v138_v48  ;;  %v137_v55 = vld [vmem:[#allocation10 + $0x100] sm:$0xff]  ;;  %v139_v57 = vld [vmem:[#allocation10 + $0x110] sm:$0xff] }
  0x6a   :  { %1114 = vmatpush1.bf16.msra.mxu0 %v1113_v36  ;;  %v141_v56 = vld [vmem:[#allocation10 + $0x120] sm:$0xff]  ;;  %v1151_v58 = vpack.c.bf16 %v144_v51, %v140_v50  ;;  %v143_v59 = vld [vmem:[#allocation10 + $0x130] sm:$0xff]  ;;  %v146_v60 = vld [vmem:[#allocation10 + $0x148] sm:$0xff]  ;;  %v1654_v44 = vshrl.u32 %v171_v43, 7 }
  0x6b   :  { %1146 = vmatpush1.bf16.msra.mxu1 %v1145_v40  ;;  %1116 = vmatprep.subr.bf16.mxu0 %v1115_v41  ;;  %v150_v61 = vld [vmem:[#allocation10 + $0x168] sm:$0xff]  ;;  %v148_v62 = vld [vmem:[#allocation10 + $0x158] sm:$0xff]  ;;  %v1121_v0 = vpack.c.bf16 %v141_v56, %v137_v55  ;;  %v1153_v1 = vpack.c.bf16 %v143_v59, %v139_v57  ;;  %v145_v3 = vld [vmem:[#allocation10 + $0x140] sm:$0xff] }
  0x6c   :  { %1148 = vmatprep.subr.bf16.mxu1 %v1147_v45  ;;  %v152_v63 = vld [vmem:[#allocation10 + $0x178] sm:$0xff]  ;;  %v1123_v2 = vpack.c.bf16 %v150_v61, %v146_v60  ;;  %v149_v4 = vld [vmem:[#allocation10 + $0x160] sm:$0xff]  ;;  %v147_v5 = vld [vmem:[#allocation10 + $0x150] sm:$0xff]  ;;  %v173_v45 = vsub.s32 0, %v1654_v44  ;;  %v181_v47 = vsub.s32 2, %v1654_v44  ;;  %v177_v48 = vsub.s32 1, %v1654_v44 }
  0x6d   :  { %v1155_v6 = vpack.c.bf16 %v152_v63, %v148_v62  ;;  %v151_v7 = vld [vmem:[#allocation10 + $0x170] sm:$0xff]  ;;  %v154_v9 = vld [vmem:[#allocation10 + $0x188] sm:$0xff]  ;;  %v156_v11 = vld [vmem:[#allocation10 + $0x198] sm:$0xff]  ;;  %v1125_v13 = vpack.c.bf16 %v149_v4, %v145_v3  ;;  %v185_v49 = vsub.s32 3, %v1654_v44 }
  0x6e   :  { %1118 = vmatpush1.bf16.msra.mxu0 %v1117_v52  ;;  %v158_v10 = vld [vmem:[#allocation10 + $0x1a8] sm:$0xff]  ;;  %v160_v12 = vld [vmem:[#allocation10 + $0x1b8] sm:$0xff]  ;;  %v1157_v14 = vpack.c.bf16 %v151_v7, %v147_v5  ;;  %v153_v16 = vld [vmem:[#allocation10 + $0x180] sm:$0xff] }
  0x6f   :  { %1150 = vmatpush1.bf16.msra.mxu1 %v1149_v53  ;;  %1120 = vmatprep.subr.bf16.mxu0 %v1119_v54  ;;  %v1127_v15 = vpack.c.bf16 %v158_v10, %v154_v9  ;;  %v157_v17 = vld [vmem:[#allocation10 + $0x1a0] sm:$0xff]  ;;  %v155_v18 = vld [vmem:[#allocation10 + $0x190] sm:$0xff]  ;;  %v1159_v19 = vpack.c.bf16 %v160_v12, %v156_v11  ;;  %v162_v21 = vld [vmem:[#allocation10 + $0x1c8] sm:$0xff] }
  0x70   :  { %1152 = vmatprep.subr.bf16.mxu1 %v1151_v58  ;;  %v159_v20 = vld [vmem:[#allocation10 + $0x1b0] sm:$0xff]  ;;  %v166_v22 = vld [vmem:[#allocation10 + $0x1e8] sm:$0xff]  ;;  %v164_v23 = vld [vmem:[#allocation10 + $0x1d8] sm:$0xff]  ;;  %v1129_v25 = vpack.c.bf16 %v157_v17, %v153_v16 }
  0x71   :  { %v168_v24 = vld [vmem:[#allocation10 + $0x1f8] sm:$0xff]  ;;  %v1161_v26 = vpack.c.bf16 %v159_v20, %v155_v18  ;;  %v1131_v27 = vpack.c.bf16 %v166_v22, %v162_v21  ;;  %v161_v28 = vld [vmem:[#allocation10 + $0x1c0] sm:$0xff]  ;;  %v163_v31 = vld [vmem:[#allocation10 + $0x1d0] sm:$0xff] }
  0x72   :  { %1122 = vmatpush1.bf16.msra.mxu0 %v1121_v0  ;;  %v165_v29 = vld [vmem:[#allocation10 + $0x1e0] sm:$0xff]  ;;  %v1163_v30 = vpack.c.bf16 %v168_v24, %v164_v23  ;;  %v167_v32 = vld [vmem:[#allocation10 + $0x1f0] sm:$0xff]  ;;  %v98_v36 = vld [vmem:[#allocation2 + $0x8] sm:$0xff] }
  0x73   :  { %1154 = vmatpush1.bf16.msra.mxu1 %v1153_v1  ;;  %1124 = vmatprep.subr.bf16.mxu0 %v1123_v2  ;;  %v1133_v33 = vpack.c.bf16 %v165_v29, %v161_v28  ;;  %v1165_v34 = vpack.c.bf16 %v167_v32, %v163_v31  ;;  %v97_v35 = vld [vmem:[#allocation2] sm:$0xff]  ;;  %v99_v37 = vld [vmem:[#allocation2 + $0x10] sm:$0xff]  ;;  %v100_v38 = vld [vmem:[#allocation2 + $0x18] sm:$0xff] }
  0x74   :  { %1156 = vmatprep.subr.bf16.mxu1 %v1155_v6  ;;  %v101_v39 = vld [vmem:[#allocation2 + $0x20] sm:$0xff]  ;;  %v102_v40 = vld [vmem:[#allocation2 + $0x28] sm:$0xff]  ;;  %v103_v41 = vld [vmem:[#allocation2 + $0x30] sm:$0xff] }
  0x75   :  { %v104_v42 = vld [vmem:[#allocation2 + $0x38] sm:$0xff]  ;;  %v169_v46 = vld [vmem:[%s1826_s3] sm:$0xf]  ;;  %s1715_s3 = smov 0  }
  0x76   :  { %1126 = vmatpush1.bf16.msra.mxu0 %v1125_v13  ;;  %v1665_v50 = vrot.slane %v169_v46, %v173_v45  ;;  %v1669_v51 = vrot.slane %v169_v46, %v181_v47  ;;  %v1673_v52 = vrot.slane %v169_v46, %v177_v48  ;;  %v1677_v53 = vrot.slane %v169_v46, %v185_v49 }
  0x77   :  { %1158 = vmatpush1.bf16.msra.mxu1 %v1157_v14  ;;  %1128 = vmatprep.subr.bf16.mxu0 %v1127_v15 }
  0x78   :  { %1160 = vmatprep.subr.bf16.mxu1 %v1159_v19 }
  0x7a   :  { %1130 = vmatpush1.bf16.msra.mxu0 %v1129_v25 }
  0x7b   :  { %1162 = vmatpush1.bf16.msra.mxu1 %v1161_v26  ;;  %1132 = vmatprep.subr.bf16.mxu0 %v1131_v27 }
  0x7c   :  { %1164 = vmatprep.subr.bf16.mxu1 %v1163_v30 }
  0x7e   :  { %1134 = vmatpush1.bf16.msra.mxu0 %v1133_v33 }
  0x7f   :  { %1166 = vmatpush1.bf16.msra.mxu1 %v1165_v34 }
  0x81   :  { %256 = vmatmul.mubr.f32.vlgmr.msra.gmra.mrb[0].mxu0 %v97_v35 }
  0x82   :  { %369 = vmatmul.mubr.f32.vlgmr.msra.gmra.mrb[0].mxu1 %v97_v35  ;;  %261 = vmatprep.mubr.f32.mxu0 %v1528_v8 }
  0x83   :  { %374 = vmatprep.mubr.f32.mxu1 %v1528_v8 }
  0x85   :  { %262 = vmatmul.mubr.f32.gmra.mrb[2].mxu0 %v98_v36 }
  0x86   :  { %375 = vmatmul.mubr.f32.gmra.mrb[2].mxu1 %v98_v36  ;;  %267 = vmatprep.mubr.f32.mxu0 %v1528_v8 }
  0x87   :  { %380 = vmatprep.mubr.f32.mxu1 %v1528_v8 }
  0x89   :  { %268 = vmatmul.mubr.f32.gmra.mrb[4].mxu0 %v99_v37 }
  0x8a   :  { %381 = vmatmul.mubr.f32.gmra.mrb[4].mxu1 %v99_v37  ;;  %273 = vmatprep.mubr.f32.mxu0 %v1528_v8 }
  0x8b   :  { %386 = vmatprep.mubr.f32.mxu1 %v1528_v8 }
  0x8d   :  { %274 = vmatmul.mubr.f32.gmra.mrb[6].mxu0 %v100_v38 }
  0x8e   :  { %387 = vmatmul.mubr.f32.gmra.mrb[6].mxu1 %v100_v38  ;;  %279 = vmatprep.mubr.f32.mxu0 %v1528_v8 }
  0x8f   :  { %392 = vmatprep.mubr.f32.mxu1 %v1528_v8 }
  0x91   :  { %280 = vmatmul.mubr.f32.gmra.mrb[8].mxu0 %v101_v39 }
  0x92   :  { %393 = vmatmul.mubr.f32.gmra.mrb[8].mxu1 %v101_v39  ;;  %285 = vmatprep.mubr.f32.mxu0 %v1528_v8 }
  0x93   :  { %398 = vmatprep.mubr.f32.mxu1 %v1528_v8 }
  0x95   :  { %286 = vmatmul.mubr.f32.gmra.mrb[10].mxu0 %v102_v40 }
  0x96   :  { %399 = vmatmul.mubr.f32.gmra.mrb[10].mxu1 %v102_v40  ;;  %291 = vmatprep.mubr.f32.mxu0 %v1528_v8 }
  0x97   :  { %404 = vmatprep.mubr.f32.mxu1 %v1528_v8 }
  0x99   :  { %292 = vmatmul.mubr.f32.gmra.mrb[12].mxu0 %v103_v41 }
  0x9a   :  { %405 = vmatmul.mubr.f32.gmra.mrb[12].mxu1 %v103_v41  ;;  %297 = vmatprep.mubr.f32.mxu0 %v1528_v8 }
  0x9b   :  { %410 = vmatprep.mubr.f32.mxu1 %v1528_v8 }
  0x9d   :  { %298 = vmatmul.mubr.f32.gmra.mrb[14].mxu0 %v104_v42 }
  0x9e   :  { %411 = vmatmul.mubr.f32.gmra.mrb[14].mxu1 %v104_v42 }
 0x154   :  { %v257_v54 = vpop.f32.mrb[0].mxu0 }
 0x155   :  { %v258_v55 = vadd.f32 %v257_v54, %v1665_v50  ;;  %v370_v56 = vpop.f32.mrb[0].mxu1  ;;  %v259_v57 = vpop.f32.mrb[1].mxu0 }
 0x156   :  { %v371_v58 = vadd.f32 %v370_v56, %v1669_v51  ;;  %v260_v59 = vadd.f32 %v259_v57, %v1673_v52  ;;  %v372_v60 = vpop.f32.mrb[1].mxu1 }
 0x157   :  { %417 = vst [vmem:[#allocation3] sm:$0xff] %v258_v55  ;;  %v373_v61 = vadd.f32 %v372_v60, %v1677_v53 }
 0x158   :  { %419 = vst [vmem:[#allocation3 + $0x10] sm:$0xff] %v371_v58  ;;  %418 = vst [vmem:[#allocation3 + $0x8] sm:$0xff] %v260_v59  ;;  %v263_v62 = vpop.f32.mrb[2].mxu0 }
 0x159   :  { %420 = vst [vmem:[#allocation3 + $0x18] sm:$0xff] %v373_v61  ;;  %v264_v63 = vadd.f32 %v263_v62, %v1665_v50  ;;  %v376_v0 = vpop.f32.mrb[2].mxu1  ;;  %v265_v1 = vpop.f32.mrb[3].mxu0 }
 0x15a   :  { %v377_v2 = vadd.f32 %v376_v0, %v1669_v51  ;;  %v266_v3 = vadd.f32 %v265_v1, %v1673_v52  ;;  %v378_v4 = vpop.f32.mrb[3].mxu1  ;;  %v1711_v0 = vmov 0.0   ;;  %v1713_v1 = vmov 0.0  }
 0x15b   :  { %421 = vst [vmem:[#allocation3 + $0x20] sm:$0xff] %v264_v63  ;;  %v379_v5 = vadd.f32 %v378_v4, %v1677_v53 }
 0x15c   :  { %423 = vst [vmem:[#allocation3 + $0x30] sm:$0xff] %v377_v2  ;;  %422 = vst [vmem:[#allocation3 + $0x28] sm:$0xff] %v266_v3  ;;  %v269_v6 = vpop.f32.mrb[4].mxu0 }
 0x15d   :  { %424 = vst [vmem:[#allocation3 + $0x38] sm:$0xff] %v379_v5  ;;  %v270_v7 = vadd.f32 %v269_v6, %v1665_v50  ;;  %v382_v9 = vpop.f32.mrb[4].mxu1  ;;  %v271_v10 = vpop.f32.mrb[5].mxu0 }
 0x15e   :  { %v383_v11 = vadd.f32 %v382_v9, %v1669_v51  ;;  %v272_v12 = vadd.f32 %v271_v10, %v1673_v52  ;;  %v384_v13 = vpop.f32.mrb[5].mxu1 }
 0x15f   :  { %425 = vst [vmem:[#allocation3 + $0x40] sm:$0xff] %v270_v7  ;;  %v385_v14 = vadd.f32 %v384_v13, %v1677_v53 }
 0x160   :  { %427 = vst [vmem:[#allocation3 + $0x50] sm:$0xff] %v383_v11  ;;  %426 = vst [vmem:[#allocation3 + $0x48] sm:$0xff] %v272_v12  ;;  %v275_v15 = vpop.f32.mrb[6].mxu0 }
 0x161   :  { %428 = vst [vmem:[#allocation3 + $0x58] sm:$0xff] %v385_v14  ;;  %v276_v16 = vadd.f32 %v275_v15, %v1665_v50  ;;  %v388_v17 = vpop.f32.mrb[6].mxu1  ;;  %v277_v18 = vpop.f32.mrb[7].mxu0 }
 0x162   :  { %v389_v19 = vadd.f32 %v388_v17, %v1669_v51  ;;  %v278_v20 = vadd.f32 %v277_v18, %v1673_v52  ;;  %v390_v21 = vpop.f32.mrb[7].mxu1 }
 0x163   :  { %429 = vst [vmem:[#allocation3 + $0x60] sm:$0xff] %v276_v16  ;;  %v391_v22 = vadd.f32 %v390_v21, %v1677_v53 }
 0x164   :  { %431 = vst [vmem:[#allocation3 + $0x70] sm:$0xff] %v389_v19  ;;  %430 = vst [vmem:[#allocation3 + $0x68] sm:$0xff] %v278_v20  ;;  %v281_v23 = vpop.f32.mrb[8].mxu0 }
 0x165   :  { %432 = vst [vmem:[#allocation3 + $0x78] sm:$0xff] %v391_v22  ;;  %v282_v24 = vadd.f32 %v281_v23, %v1665_v50  ;;  %v394_v25 = vpop.f32.mrb[8].mxu1  ;;  %v283_v26 = vpop.f32.mrb[9].mxu0 }
 0x166   :  { %v395_v27 = vadd.f32 %v394_v25, %v1669_v51  ;;  %v284_v28 = vadd.f32 %v283_v26, %v1673_v52  ;;  %v396_v29 = vpop.f32.mrb[9].mxu1 }
 0x167   :  { %433 = vst [vmem:[#allocation3 + $0x80] sm:$0xff] %v282_v24  ;;  %v397_v30 = vadd.f32 %v396_v29, %v1677_v53 }
 0x168   :  { %435 = vst [vmem:[#allocation3 + $0x90] sm:$0xff] %v395_v27  ;;  %434 = vst [vmem:[#allocation3 + $0x88] sm:$0xff] %v284_v28  ;;  %v287_v31 = vpop.f32.mrb[10].mxu0 }
 0x169   :  { %436 = vst [vmem:[#allocation3 + $0x98] sm:$0xff] %v397_v30  ;;  %v288_v32 = vadd.f32 %v287_v31, %v1665_v50  ;;  %v400_v33 = vpop.f32.mrb[10].mxu1  ;;  %v289_v34 = vpop.f32.mrb[11].mxu0 }
 0x16a   :  { %v401_v35 = vadd.f32 %v400_v33, %v1669_v51  ;;  %v290_v36 = vadd.f32 %v289_v34, %v1673_v52  ;;  %v402_v37 = vpop.f32.mrb[11].mxu1 }
 0x16b   :  { %437 = vst [vmem:[#allocation3 + $0xa0] sm:$0xff] %v288_v32  ;;  %v403_v38 = vadd.f32 %v402_v37, %v1677_v53 }
 0x16c   :  { %439 = vst [vmem:[#allocation3 + $0xb0] sm:$0xff] %v401_v35  ;;  %438 = vst [vmem:[#allocation3 + $0xa8] sm:$0xff] %v290_v36  ;;  %v293_v39 = vpop.f32.mrb[12].mxu0 }
 0x16d   :  { %440 = vst [vmem:[#allocation3 + $0xb8] sm:$0xff] %v403_v38  ;;  %v294_v40 = vadd.f32 %v293_v39, %v1665_v50  ;;  %v406_v41 = vpop.f32.mrb[12].mxu1  ;;  %v295_v42 = vpop.f32.mrb[13].mxu0 }
 0x16e   :  { %v407_v43 = vadd.f32 %v406_v41, %v1669_v51  ;;  %v296_v46 = vadd.f32 %v295_v42, %v1673_v52  ;;  %v408_v54 = vpop.f32.mrb[13].mxu1 }
 0x16f   :  { %441 = vst [vmem:[#allocation3 + $0xc0] sm:$0xff] %v294_v40  ;;  %v409_v55 = vadd.f32 %v408_v54, %v1677_v53 }
 0x170   :  { %443 = vst [vmem:[#allocation3 + $0xd0] sm:$0xff] %v407_v43  ;;  %442 = vst [vmem:[#allocation3 + $0xc8] sm:$0xff] %v296_v46  ;;  %v299_v56 = vpop.f32.mrb[14].mxu0 }
 0x171   :  { %444 = vst [vmem:[#allocation3 + $0xd8] sm:$0xff] %v409_v55  ;;  %v300_v57 = vadd.f32 %v299_v56, %v1665_v50  ;;  %v412_v58 = vpop.f32.mrb[14].mxu1  ;;  %v301_v59 = vpop.f32.mrb[15].mxu0 }
 0x172   :  { %v413_v60 = vadd.f32 %v412_v58, %v1669_v51  ;;  %v302_v61 = vadd.f32 %v301_v59, %v1673_v52  ;;  %v414_v62 = vpop.f32.mrb[15].mxu1 }
 0x173   :  { %445 = vst [vmem:[#allocation3 + $0xe0] sm:$0xff] %v300_v57  ;;  %v415_v63 = vadd.f32 %v414_v62, %v1677_v53 }
 0x174   :  { %447 = vst [vmem:[#allocation3 + $0xf0] sm:$0xff] %v413_v60  ;;  %446 = vst [vmem:[#allocation3 + $0xe8] sm:$0xff] %v302_v61 }
 0x175   :  { %448 = vst [vmem:[#allocation3 + $0xf8] sm:$0xff] %v415_v63 }
 0x176 LB: > { %v468_v50 = vld [vmem:[#allocation12 + $0x8] sm:$0xff]  ;;  %v467_v52 = vld [vmem:[#allocation12] sm:$0xff]  ;;  %v1529_v5 = vmov 0.0   ;;  %v470_v18 = vld [vmem:[#allocation12 + $0x18] sm:$0xff]  ;;  %s1096_s12 = sshll.u32 %s1517_s3, 3  ;;  %s454_s3 = sadd.s32 1, %s1517_s3   ;;  %s1517_s3 = sphi %s1715_s3, %s454_s3   ;;  %v1513_v1 = vphi %v1713_v1, %v700_v1   ;;  %v1509_v0 = vphi %v1711_v0, %v698_v0  }
 0x177   : > { %v472_v51 = vld [vmem:[#allocation12 + $0x28] sm:$0xff]  ;;  %v471_v2 = vld [vmem:[#allocation12 + $0x20] sm:$0xff]  ;;  %595 = vmatprep.mubr.f32.mxu0 %v1529_v5  ;;  %666 = vmatprep.mubr.f32.mxu1 %v1529_v5  ;;  %v474_v19 = vld [vmem:[#allocation12 + $0x38] sm:$0xff]  ;;  %s458_s13 = sshra.s32 %s1096_s12, 3  ;;  %s701_s18 = scalar_lea.vmem [#allocation4], %s1096_s12 }
 0x178   : > { %v1167_v53 = vpack.c.bf16 %v472_v51, %v468_v50  ;;  %v476_v3 = vld [vmem:[#allocation12 + $0x48] sm:$0xff]  ;;  %v1169_v6 = vpack.c.bf16 %v471_v2, %v467_v52  ;;  %v475_v9 = vld [vmem:[#allocation12 + $0x40] sm:$0xff]  ;;  %v1199_v21 = vpack.c.bf16 %v474_v19, %v470_v18  ;;  %v469_v22 = vld [vmem:[#allocation12 + $0x10] sm:$0xff]  ;;  %s1102_s14 = sshll.u32 %s458_s13, 5  ;;  %p451_p10 = scmp.ge.s32.totalorder %s454_s3, 8  }
 0x179   : > { %v480_v4 = vld [vmem:[#allocation12 + $0x68] sm:$0xff]  ;;  %v479_v10 = vld [vmem:[#allocation12 + $0x60] sm:$0xff]  ;;  %v473_v23 = vld [vmem:[#allocation12 + $0x30] sm:$0xff]  ;;  %s462_s17 = scalar_lea.vmem [#allocation3], %s1102_s14 }
 0x17a   : > { %v1171_v7 = vpack.c.bf16 %v480_v4, %v476_v3  ;;  %v484_v11 = vld [vmem:[#allocation12 + $0x88] sm:$0xff]  ;;  %1168 = vmatprep.subr.bf16.mxu0 %v1167_v53  ;;  %v1173_v13 = vpack.c.bf16 %v479_v10, %v475_v9  ;;  %v483_v14 = vld [vmem:[#allocation12 + $0x80] sm:$0xff]  ;;  %v1201_v24 = vpack.c.bf16 %v473_v23, %v469_v22  ;;  %1200 = vmatprep.subr.bf16.mxu1 %v1199_v21  ;;  %v478_v26 = vld [vmem:[#allocation12 + $0x58] sm:$0xff] }
 0x17b   : > { %v488_v12 = vld [vmem:[#allocation12 + $0xa8] sm:$0xff]  ;;  %1170 = vmatpush1.bf16.msra.mxu0 %v1169_v6  ;;  %v487_v15 = vld [vmem:[#allocation12 + $0xa0] sm:$0xff]  ;;  %v482_v27 = vld [vmem:[#allocation12 + $0x78] sm:$0xff] }
 0x17c   : > { %1172 = vmatprep.subr.bf16.mxu0 %v1171_v7  ;;  %v1175_v16 = vpack.c.bf16 %v488_v12, %v484_v11  ;;  %v492_v17 = vld [vmem:[#allocation12 + $0xc8] sm:$0xff]  ;;  %v1177_v25 = vpack.c.bf16 %v487_v15, %v483_v14  ;;  %v477_v28 = vld [vmem:[#allocation12 + $0x50] sm:$0xff]  ;;  %v491_v30 = vld [vmem:[#allocation12 + $0xc0] sm:$0xff]  ;;  %1202 = vmatpush1.bf16.msra.mxu1 %v1201_v24  ;;  %v1203_v32 = vpack.c.bf16 %v482_v27, %v478_v26 }
 0x17d   : > { %v496_v20 = vld [vmem:[#allocation12 + $0xe8] sm:$0xff]  ;;  %v495_v31 = vld [vmem:[#allocation12 + $0xe0] sm:$0xff]  ;;  %v481_v33 = vld [vmem:[#allocation12 + $0x70] sm:$0xff] }
 0x17e   : > { %v1179_v29 = vpack.c.bf16 %v496_v20, %v492_v17  ;;  %v500_v34 = vld [vmem:[#allocation12 + $0x108] sm:$0xff]  ;;  %v1205_v36 = vpack.c.bf16 %v481_v33, %v477_v28  ;;  %v486_v37 = vld [vmem:[#allocation12 + $0x98] sm:$0xff]  ;;  %1204 = vmatprep.subr.bf16.mxu1 %v1203_v32  ;;  %v485_v39 = vld [vmem:[#allocation12 + $0x90] sm:$0xff]  ;;  %v1181_v41 = vpack.c.bf16 %v495_v31, %v491_v30 }
 0x17f   : > { %1174 = vmatpush1.bf16.msra.mxu0 %v1173_v13  ;;  %v504_v35 = vld [vmem:[#allocation12 + $0x128] sm:$0xff]  ;;  %v490_v38 = vld [vmem:[#allocation12 + $0xb8] sm:$0xff]  ;;  %v489_v40 = vld [vmem:[#allocation12 + $0xb0] sm:$0xff] }
 0x180   : > { %1176 = vmatprep.subr.bf16.mxu0 %v1175_v16  ;;  %v499_v42 = vld [vmem:[#allocation12 + $0x100] sm:$0xff]  ;;  %v1207_v46 = vpack.c.bf16 %v490_v38, %v486_v37  ;;  %v1183_v54 = vpack.c.bf16 %v504_v35, %v500_v34  ;;  %1206 = vmatpush1.bf16.msra.mxu1 %v1205_v36  ;;  %v508_v55 = vld [vmem:[#allocation12 + $0x148] sm:$0xff]  ;;  %v1209_v56 = vpack.c.bf16 %v489_v40, %v485_v39  ;;  %v494_v57 = vld [vmem:[#allocation12 + $0xd8] sm:$0xff] }
 0x181   : > { %v503_v43 = vld [vmem:[#allocation12 + $0x120] sm:$0xff]  ;;  %v498_v58 = vld [vmem:[#allocation12 + $0xf8] sm:$0xff]  ;;  %v512_v59 = vld [vmem:[#allocation12 + $0x168] sm:$0xff] }
 0x182   : > { %1208 = vmatprep.subr.bf16.mxu1 %v1207_v46  ;;  %v1211_v60 = vpack.c.bf16 %v498_v58, %v494_v57  ;;  %v493_v61 = vld [vmem:[#allocation12 + $0xd0] sm:$0xff]  ;;  %v1185_v63 = vpack.c.bf16 %v503_v43, %v499_v42  ;;  %v502_v50 = vld [vmem:[#allocation12 + $0x118] sm:$0xff]  ;;  %v1187_v52 = vpack.c.bf16 %v512_v59, %v508_v55  ;;  %v507_v53 = vld [vmem:[#allocation12 + $0x140] sm:$0xff] }
 0x183   : > { %1178 = vmatpush1.bf16.msra.mxu0 %v1177_v25  ;;  %v497_v62 = vld [vmem:[#allocation12 + $0xf0] sm:$0xff]  ;;  %v506_v51 = vld [vmem:[#allocation12 + $0x138] sm:$0xff]  ;;  %v511_v2 = vld [vmem:[#allocation12 + $0x160] sm:$0xff] }
 0x184   : > { %1180 = vmatprep.subr.bf16.mxu0 %v1179_v29  ;;  %1210 = vmatpush1.bf16.msra.mxu1 %v1209_v56  ;;  %v516_v3 = vld [vmem:[#allocation12 + $0x188] sm:$0xff]  ;;  %v1213_v4 = vpack.c.bf16 %v497_v62, %v493_v61  ;;  %v1215_v6 = vpack.c.bf16 %v506_v51, %v502_v50  ;;  %v501_v7 = vld [vmem:[#allocation12 + $0x110] sm:$0xff]  ;;  %v510_v10 = vld [vmem:[#allocation12 + $0x158] sm:$0xff]  ;;  %v1189_v12 = vpack.c.bf16 %v511_v2, %v507_v53 }
 0x185   : > { %v520_v5 = vld [vmem:[#allocation12 + $0x1a8] sm:$0xff]  ;;  %1212 = vmatprep.subr.bf16.mxu1 %v1211_v60  ;;  %v505_v9 = vld [vmem:[#allocation12 + $0x130] sm:$0xff]  ;;  %v514_v11 = vld [vmem:[#allocation12 + $0x178] sm:$0xff] }
 0x186   : > { %v1191_v13 = vpack.c.bf16 %v520_v5, %v516_v3  ;;  %v515_v14 = vld [vmem:[#allocation12 + $0x180] sm:$0xff]  ;;  %v524_v16 = vld [vmem:[#allocation12 + $0x1c8] sm:$0xff]  ;;  %v1217_v17 = vpack.c.bf16 %v505_v9, %v501_v7  ;;  %v1219_v19 = vpack.c.bf16 %v514_v11, %v510_v10  ;;  %v509_v20 = vld [vmem:[#allocation12 + $0x150] sm:$0xff] }
 0x187   : > { %1182 = vmatpush1.bf16.msra.mxu0 %v1181_v41  ;;  %v519_v15 = vld [vmem:[#allocation12 + $0x1a0] sm:$0xff]  ;;  %v528_v18 = vld [vmem:[#allocation12 + $0x1e8] sm:$0xff]  ;;  %v513_v21 = vld [vmem:[#allocation12 + $0x170] sm:$0xff] }
 0x188   : > { %1184 = vmatprep.subr.bf16.mxu0 %v1183_v54  ;;  %1214 = vmatpush1.bf16.msra.mxu1 %v1213_v4  ;;  %v518_v22 = vld [vmem:[#allocation12 + $0x198] sm:$0xff]  ;;  %v1193_v24 = vpack.c.bf16 %v519_v15, %v515_v14  ;;  %v1195_v25 = vpack.c.bf16 %v528_v18, %v524_v16  ;;  %v523_v26 = vld [vmem:[#allocation12 + $0x1c0] sm:$0xff]  ;;  %v1221_v28 = vpack.c.bf16 %v513_v21, %v509_v20  ;;  %v517_v30 = vld [vmem:[#allocation12 + $0x190] sm:$0xff] }
 0x189   : > { %1216 = vmatprep.subr.bf16.mxu1 %v1215_v6  ;;  %v522_v23 = vld [vmem:[#allocation12 + $0x1b8] sm:$0xff]  ;;  %v527_v27 = vld [vmem:[#allocation12 + $0x1e0] sm:$0xff]  ;;  %v521_v31 = vld [vmem:[#allocation12 + $0x1b0] sm:$0xff] }
 0x18a   : > { %v1223_v29 = vpack.c.bf16 %v522_v23, %v518_v22  ;;  %v526_v32 = vld [vmem:[#allocation12 + $0x1d8] sm:$0xff]  ;;  %v1197_v34 = vpack.c.bf16 %v527_v27, %v523_v26  ;;  %v1225_v35 = vpack.c.bf16 %v521_v31, %v517_v30  ;;  %v525_v37 = vld [vmem:[#allocation12 + $0x1d0] sm:$0xff]  ;;  %v463_v40 = vld [vmem:[%s462_s17] sm:$0xff] }
 0x18b   : > { %1186 = vmatpush1.bf16.msra.mxu0 %v1185_v63  ;;  %v530_v33 = vld [vmem:[#allocation12 + $0x1f8] sm:$0xff]  ;;  %v529_v38 = vld [vmem:[#allocation12 + $0x1f0] sm:$0xff]  ;;  %v464_v41 = vld [vmem:[%s462_s17 + $0x8] sm:$0xff] }
 0x18c   : > { %1188 = vmatprep.subr.bf16.mxu0 %v1187_v52  ;;  %1218 = vmatpush1.bf16.msra.mxu1 %v1217_v17  ;;  %v1227_v36 = vpack.c.bf16 %v530_v33, %v526_v32  ;;  %v1229_v39 = vpack.c.bf16 %v529_v38, %v525_v37  ;;  %v465_v57 = vld [vmem:[%s462_s17 + $0x10] sm:$0xff]  ;;  %v712_v11 = vld [vmem:[#allocation13 + $0x8] sm:$0xff] (%p451_p10)  ;;  %v718_v15 = vld [vmem:[#allocation13 + $0x38] sm:$0xff] (%p451_p10) }
 0x18d   : > { %1220 = vmatprep.subr.bf16.mxu1 %v1219_v19  ;;  %v711_v16 = vld [vmem:[#allocation13] sm:$0xff] (%p451_p10)  ;;  %v713_v20 = vld [vmem:[#allocation13 + $0x10] sm:$0xff] (%p451_p10)  ;;  %v720_v22 = vld [vmem:[#allocation13 + $0x48] sm:$0xff] (%p451_p10) }
 0x18e   :  { %v715_v17 = vld [vmem:[#allocation13 + $0x20] sm:$0xff] (%p451_p10)  ;;  %v717_v21 = vld [vmem:[#allocation13 + $0x30] sm:$0xff] (%p451_p10)  ;;  %v728_v33 = vld [vmem:[#allocation13 + $0x88] sm:$0xff] (%p451_p10) }
 0x18f   : > { %1190 = vmatpush1.bf16.msra.mxu0 %v1189_v12  ;;  %v716_v12 = vld [vmem:[#allocation13 + $0x28] sm:$0xff] (%p451_p10)  ;;  %v1233_v19 = vpack.c.bf16 (%p451_p10), %v715_v17, %v711_v16  ;;  %v1265_v23 = vpack.c.bf16 (%p451_p10), %v717_v21, %v713_v20  ;;  %v721_v30 = vld [vmem:[#allocation13 + $0x50] sm:$0xff] (%p451_p10)  ;;  %v730_v37 = vld [vmem:[#allocation13 + $0x98] sm:$0xff] (%p451_p10) }
 0x190   : > { %1192 = vmatprep.subr.bf16.mxu0 %v1191_v13  ;;  %1222 = vmatpush1.bf16.msra.mxu1 %v1221_v28  ;;  %v714_v13 = vld [vmem:[#allocation13 + $0x18] sm:$0xff] (%p451_p10)  ;;  %v1231_v14 = vpack.c.bf16 (%p451_p10), %v716_v12, %v712_v11  ;;  %v719_v28 = vld [vmem:[#allocation13 + $0x40] sm:$0xff] (%p451_p10)  ;;  %v725_v32 = vld [vmem:[#allocation13 + $0x70] sm:$0xff] (%p451_p10) }
 0x191   : > { %1224 = vmatprep.subr.bf16.mxu1 %v1223_v29  ;;  %v1263_v18 = vpack.c.bf16 (%p451_p10), %v718_v15, %v714_v13  ;;  %v723_v29 = vld [vmem:[#allocation13 + $0x60] sm:$0xff] (%p451_p10)  ;;  %v734_v38 = vld [vmem:[#allocation13 + $0xb8] sm:$0xff] (%p451_p10)  ;;  %v752_v11 = vld [vmem:[#allocation13 + $0x148] sm:$0xff] (%p451_p10) }
 0x192   :  { %v1237_v31 = vpack.c.bf16 (%p451_p10), %v723_v29, %v719_v28  ;;  %v756_v12 = vld [vmem:[#allocation13 + $0x168] sm:$0xff] (%p451_p10)  ;;  %v754_v13 = vld [vmem:[#allocation13 + $0x158] sm:$0xff] (%p451_p10)  ;;  %v753_v20 = vld [vmem:[#allocation13 + $0x150] sm:$0xff] (%p451_p10) }
 0x193   : > { %1194 = vmatpush1.bf16.msra.mxu0 %v1193_v24  ;;  %v724_v24 = vld [vmem:[#allocation13 + $0x68] sm:$0xff] (%p451_p10)  ;;  %v1251_v17 = vpack.c.bf16 (%p451_p10), %v756_v12, %v752_v11  ;;  %v759_v29 = vld [vmem:[#allocation13 + $0x180] sm:$0xff] (%p451_p10) }
 0x194   : > { %1196 = vmatprep.subr.bf16.mxu0 %v1195_v25  ;;  %1226 = vmatpush1.bf16.msra.mxu1 %v1225_v35  ;;  %v722_v25 = vld [vmem:[#allocation13 + $0x58] sm:$0xff] (%p451_p10)  ;;  %v1235_v26 = vpack.c.bf16 (%p451_p10), %v724_v24, %v720_v22  ;;  %v1269_v35 = vpack.c.bf16 (%p451_p10), %v725_v32, %v721_v30  ;;  %v757_v22 = vld [vmem:[#allocation13 + $0x170] sm:$0xff] (%p451_p10)  ;;  %v764_v24 = vld [vmem:[#allocation13 + $0x1a8] sm:$0xff] (%p451_p10) }
 0x195   : > { %1228 = vmatprep.subr.bf16.mxu1 %v1227_v36  ;;  %v763_v30 = vld [vmem:[#allocation13 + $0x1a0] sm:$0xff] (%p451_p10) }
 0x197   : > { %1198 = vmatpush1.bf16.msra.mxu0 %v1197_v34  ;;  %v732_v34 = vld [vmem:[#allocation13 + $0xa8] sm:$0xff] (%p451_p10) }
 0x198   : > { %1230 = vmatpush1.bf16.msra.mxu1 %v1229_v39  ;;  %1232 = vmatprep.subr.bf16.mxu0 (%p451_p10), %v1231_v14  ;;  %v1239_v36 = vpack.c.bf16 (%p451_p10), %v732_v34, %v728_v33  ;;  %v727_v39 = vld [vmem:[#allocation13 + $0x80] sm:$0xff] (%p451_p10)  ;;  %v758_v14 = vld [vmem:[#allocation13 + $0x178] sm:$0xff] (%p451_p10)  ;;  %v765_v33 = vld [vmem:[#allocation13 + $0x1b0] sm:$0xff] (%p451_p10) }
 0x199   :  { %1264 = vmatprep.subr.bf16.mxu1 (%p451_p10), %v1263_v18  ;;  %v751_v18 = vld [vmem:[#allocation13 + $0x140] sm:$0xff] (%p451_p10)  ;;  %v1283_v21 = vpack.c.bf16 (%p451_p10), %v758_v14, %v754_v13  ;;  %v768_v34 = vld [vmem:[#allocation13 + $0x1c8] sm:$0xff] (%p451_p10) }
 0x19a   : > { %596 = vmatmul.mubr.f32.vlgmr.msra.gmra.mrb[0].mxu0 %v1513_v1 }
 0x19b   : > { %667 = vmatmul.mubr.f32.vlgmr.msra.gmra.mrb[0].mxu1 %v1513_v1  ;;  %v466_v1 = vld [vmem:[%s462_s17 + $0x18] sm:$0xff]  ;;  %861 = vmatprep.mubr.f32.mxu0 (%p451_p10), %v1528_v8 }
 0x19c   :  { %974 = vmatprep.mubr.f32.mxu1 (%p451_p10), %v1528_v8  ;;  %1234 = vmatpush1.bf16.msra.mxu0 (%p451_p10), %v1233_v19  ;;  %v755_v19 = vld [vmem:[#allocation13 + $0x160] sm:$0xff] (%p451_p10) }
 0x19d   :  { %1266 = vmatpush1.bf16.msra.mxu1 (%p451_p10), %v1265_v23  ;;  %1236 = vmatprep.subr.bf16.mxu0 (%p451_p10), %v1235_v26  ;;  %v760_v23 = vld [vmem:[#allocation13 + $0x188] sm:$0xff] (%p451_p10)  ;;  %v1253_v26 = vpack.c.bf16 (%p451_p10), %v755_v19, %v751_v18 }
 0x19e   :  { %v1255_v28 = vpack.c.bf16 (%p451_p10), %v764_v24, %v760_v23 }
 0x1a0   :  { %1238 = vmatpush1.bf16.msra.mxu0 (%p451_p10), %v1237_v31  ;;  %v761_v31 = vld [vmem:[#allocation13 + $0x190] sm:$0xff] (%p451_p10) }
 0x1a1   :  { %1240 = vmatprep.subr.bf16.mxu0 (%p451_p10), %v1239_v36  ;;  %v770_v36 = vld [vmem:[#allocation13 + $0x1d8] sm:$0xff] (%p451_p10) }
 0x26d   : > { %v597_v42 = vpop.f32.mrb[0].mxu0 }
 0x26e   : > { %v673_v43 = vadd.f32 %v597_v42, %v463_v40  ;;  %v599_v46 = vpop.f32.mrb[1].mxu0  ;;  %v668_v58 = vpop.f32.mrb[0].mxu1  ;;  %v1271_v40 = vpack.c.bf16 (%p451_p10), %v734_v38, %v730_v37  ;;  %v729_v42 = vld [vmem:[#allocation13 + $0x90] sm:$0xff] (%p451_p10)  ;;  %v774_v37 = vld [vmem:[#allocation13 + $0x1f8] sm:$0xff] (%p451_p10)  ;;  %v1257_v38 = vpack.c.bf16 (%p451_p10), %v763_v30, %v759_v29 }
 0x26f   : > { %v674_v54 = vadd.f32 %v599_v46, %v464_v41  ;;  %v670_v59 = vpop.f32.mrb[1].mxu1  ;;  %v675_v60 = vadd.f32 %v668_v58, %v465_v57  ;;  %v731_v41 = vld [vmem:[#allocation13 + $0xa0] sm:$0xff] (%p451_p10) }
 0x270   : > { %v1099_v55 = vmul.f32 -1.442695, %v673_v43  ;;  %v676_v62 = vadd.f32 %v670_v59, %v466_v1  ;;  %v733_v43 = vld [vmem:[#allocation13 + $0xb0] sm:$0xff] (%p451_p10)  ;;  %v1241_v46 = vpack.c.bf16 (%p451_p10), %v731_v41, %v727_v39  ;;  %v742_v59 = vld [vmem:[#allocation13 + $0xf8] sm:$0xff] (%p451_p10)  ;;  %v1289_v39 = vpack.c.bf16 (%p451_p10), %v765_v33, %v761_v31  ;;  %v767_v41 = vld [vmem:[#allocation13 + $0x1c0] sm:$0xff] (%p451_p10) }
 0x271   : > { %v1100_v56 = vmul.f32 -1.442695, %v674_v54  ;;  %v1101_v61 = vmul.f32 -1.442695, %v675_v60  ;;  %v736_v54 = vld [vmem:[#allocation13 + $0xc8] sm:$0xff] (%p451_p10)  ;;  %v1273_v57 = vpack.c.bf16 (%p451_p10), %v733_v43, %v729_v42  ;;  %v735_v60 = vld [vmem:[#allocation13 + $0xc0] sm:$0xff] (%p451_p10)  ;;  %v1291_v43 = vpack.c.bf16 (%p451_p10), %v774_v37, %v770_v36 }
 0x272   : > { %1339 = vpow2.f32 %v1099_v55  ;;  %v740_v55 = vld [vmem:[#allocation13 + $0xe8] sm:$0xff] (%p451_p10)  ;;  %1242 = vmatpush1.bf16.msra.mxu0 (%p451_p10), %v1241_v46  ;;  %v771_v42 = vld [vmem:[#allocation13 + $0x1e0] sm:$0xff] (%p451_p10)  ;;  %v769_v46 = vld [vmem:[#allocation13 + $0x1d0] sm:$0xff] (%p451_p10) }
 0x273   : > { %1341 = vpow2.f32 %v1100_v56  ;;  %v738_v56 = vld [vmem:[#allocation13 + $0xd8] sm:$0xff] (%p451_p10)  ;;  %v1243_v58 = vpack.c.bf16 (%p451_p10), %v740_v55, %v736_v54  ;;  %v773_v54 = vld [vmem:[#allocation13 + $0x1f0] sm:$0xff] (%p451_p10)  ;;  %v1261_v55 = vpack.c.bf16 (%p451_p10), %v771_v42, %v767_v41 }
 0x274   : > { %1343 = vpow2.f32 %v1101_v61  ;;  %v1275_v61 = vpack.c.bf16 (%p451_p10), %v742_v59, %v738_v56  ;;  %v1293_v56 = vpack.c.bf16 (%p451_p10), %v773_v54, %v769_v46 }
 0x275   : > { %1345 = vtanh.f32 %v676_v62  ;;  %v737_v62 = vld [vmem:[#allocation13 + $0xd0] sm:$0xff] (%p451_p10)  ;;  %1244 = vmatprep.subr.bf16.mxu0 (%p451_p10), %v1243_v58 }
 0x27c   : > { %v1340_v63 = vpop.eup %1339 }
 0x27d   : > { %v1342_v50 = vpop.eup %1341  ;;  %v686_v51 = vadd.f32 1.0, %v1340_v63  ;;  %v741_v63 = vld [vmem:[#allocation13 + $0xf0] sm:$0xff] (%p451_p10) }
 0x27e   : > { %v687_v52 = vadd.f32 1.0, %v1342_v50  ;;  %v1344_v53 = vpop.eup %1343  ;;  %v744_v50 = vld [vmem:[#allocation13 + $0x108] sm:$0xff] (%p451_p10) }
 0x27f   : > { %1347 = vrcp.f32 %v686_v51  ;;  %v1346_v2 = vpop.eup %1345  ;;  %v688_v4 = vadd.f32 1.0, %v1344_v53  ;;  %v748_v51 = vld [vmem:[#allocation13 + $0x128] sm:$0xff] (%p451_p10)  ;;  %v750_v53 = vld [vmem:[#allocation13 + $0x138] sm:$0xff] (%p451_p10) }
 0x280   : > { %1349 = vrcp.f32 %v687_v52  ;;  %v746_v52 = vld [vmem:[#allocation13 + $0x118] sm:$0xff] (%p451_p10) }
 0x281   : > { %1351 = vrcp.f32 %v688_v4  ;;  %v1247_v4 = vpack.c.bf16 (%p451_p10), %v748_v51, %v744_v50  ;;  %v775_v50 = vld [vmem:[%s1829_s6] sm:$0xf] (%p451_p10)  ;;  %s1530_s6 = smov (%p451_p10), [#allocation15]  }
 0x282   :  { %v1762_v51 = vrot.slane (%p451_p10), %v775_v50, %v173_v45  ;;  %s1060_s1 = sshll.u32 (%p451_p10), %s1530_s6, 4  ;;  %s1061_s1 = int_to_ptr.vmem [resolvable:$true] %s1060_s1 }
 0x283   :  { %s1455_s20 = scalar_lea.vmem (%p451_p10), %s1061_s1, 4096  ;;  %p1460_p12 = scmp.lt.s32.totalorder (%p451_p10), %s1061_s1, %s1061_s1 }
 0x284   :  { %p1456_p11 = scmp.ne.s32.totalorder (%p451_p10), %s1061_s1, %s1455_s20  ;;  %p1461_p13 = scmp.lt.s32.totalorder (%p451_p10), %s1455_s20, %s1455_s20 }
 0x286   :  { %p1462_p0 = por (%p451_p10), %p1461_p13, %p1460_p12 }
 0x288   :  { %p1463_p1 = pnand (%p451_p10), %p1462_p0, %p1456_p11 }
 0x289   : > { %v1348_v3 = vpop.eup %1347 }
 0x28a   : > { %v1350_v5 = vpop.eup %1349  ;;  %v697_v6 = vmul.f32 %v1348_v3, %v1346_v2  ;;  %v1277_v3 = vpack.c.bf16 (%p451_p10), %v741_v63, %v737_v62 }
 0x28b   : > { %v696_v7 = vmul.f32 %v1509_v0, %v1350_v5  ;;  %v1352_v9 = vpop.eup %1351  ;;  %v743_v5 = vld [vmem:[#allocation13 + $0x100] sm:$0xff] (%p451_p10) }
 0x28d   : > { %v698_v0 = vadd.f32 %v697_v6, %v696_v7   ;;  %v747_v6 = vld [vmem:[#allocation13 + $0x120] sm:$0xff] (%p451_p10)  ;;  %v745_v7 = vld [vmem:[#allocation13 + $0x110] sm:$0xff] (%p451_p10) }
 0x28e   :  { %v1249_v15 = vpack.c.bf16 (%p451_p10), %v747_v6, %v743_v5 }
 0x28f   : > { %1353 = vtanh.f32 %v698_v0  ;;  %v726_v0 = vld [vmem:[#allocation13 + $0x78] sm:$0xff] (%p451_p10) }
 0x290   :  { %v1267_v27 = vpack.c.bf16 (%p451_p10), %v726_v0, %v722_v25  ;;  %v762_v25 = vld [vmem:[#allocation13 + $0x198] sm:$0xff] (%p451_p10) }
 0x291   :  { %v766_v0 = vld [vmem:[#allocation13 + $0x1b8] sm:$0xff] (%p451_p10) }
 0x292   :  { %1268 = vmatprep.subr.bf16.mxu1 (%p451_p10), %v1267_v27  ;;  %v1285_v27 = vpack.c.bf16 (%p451_p10), %v757_v22, %v753_v20  ;;  %v1287_v32 = vpack.c.bf16 (%p451_p10), %v766_v0, %v762_v25 }
 0x293   :  { %1270 = vmatpush1.bf16.msra.mxu1 (%p451_p10), %v1269_v35  ;;  %v772_v35 = vld [vmem:[#allocation13 + $0x1e8] sm:$0xff] (%p451_p10) }
 0x294   :  { %1272 = vmatprep.subr.bf16.mxu1 (%p451_p10), %v1271_v40  ;;  %v1259_v40 = vpack.c.bf16 (%p451_p10), %v772_v35, %v768_v34 }
 0x296   :  { %453 = sbr.rel (!%p451_p10) target bundleno = 374 (0x176), region = 89 }
 0x297   :  { %1274 = vmatpush1.bf16.msra.mxu1 (%p451_p10), %v1273_v57 }
 0x298   :  { %1276 = vmatprep.subr.bf16.mxu1 (%p451_p10), %v1275_v61 }
 0x299   : > { %v1354_v10 = vpop.eup %1353 }
 0x29a   : > { %v700_v1 = vmul.f32 %v1354_v10, %v1352_v9   ;;  %v1279_v9 = vpack.c.bf16 (%p451_p10), %v750_v53, %v746_v52  ;;  %v749_v10 = vld [vmem:[#allocation13 + $0x130] sm:$0xff] (%p451_p10)  ;;  %v1766_v52 = vrot.slane (%p451_p10), %v775_v50, %v181_v47  ;;  %v1770_v53 = vrot.slane (%p451_p10), %v775_v50, %v177_v48 }
 0x29b   :  { %1278 = vmatpush1.bf16.msra.mxu1 (%p451_p10), %v1277_v3  ;;  %v1281_v16 = vpack.c.bf16 (%p451_p10), %v749_v10, %v745_v7 }
 0x29c   : > { %702 = vst [vmem:[%s701_s18] sm:$0xff] %v700_v1  ;;  %v739_v1 = vld [vmem:[#allocation13 + $0xe0] sm:$0xff] (%p451_p10)  ;;  %1280 = vmatprep.subr.bf16.mxu1 (%p451_p10), %v1279_v9 }
 0x29d   :  { %v1245_v2 = vpack.c.bf16 %v739_v1, %v735_v60 }
 0x29f   :  { %1246 = vmatpush1.bf16.msra.mxu0 %v1245_v2  ;;  %1282 = vmatpush1.bf16.msra.mxu1 %v1281_v16 }
 0x2a0   :  { %1248 = vmatprep.subr.bf16.mxu0 %v1247_v4  ;;  %1284 = vmatprep.subr.bf16.mxu1 %v1283_v21 }
 0x2a3   :  { %1250 = vmatpush1.bf16.msra.mxu0 %v1249_v15  ;;  %1286 = vmatpush1.bf16.msra.mxu1 %v1285_v27  ;;  %v703_v57 = vld [vmem:[#allocation4] sm:$0xff]  ;;  %v704_v58 = vld [vmem:[#allocation4 + $0x8] sm:$0xff]  ;;  %v705_v59 = vld [vmem:[#allocation4 + $0x10] sm:$0xff] }
 0x2a4   :  { %1252 = vmatprep.subr.bf16.mxu0 %v1251_v17  ;;  %1288 = vmatprep.subr.bf16.mxu1 %v1287_v32  ;;  %v706_v60 = vld [vmem:[#allocation4 + $0x18] sm:$0xff]  ;;  %v707_v1 = vld [vmem:[#allocation4 + $0x20] sm:$0xff]  ;;  %v708_v61 = vld [vmem:[#allocation4 + $0x28] sm:$0xff] }
 0x2a5   :  { %v709_v62 = vld [vmem:[#allocation4 + $0x30] sm:$0xff]  ;;  %v710_v63 = vld [vmem:[#allocation4 + $0x38] sm:$0xff] }
 0x2a7   :  { %1254 = vmatpush1.bf16.msra.mxu0 %v1253_v26  ;;  %1290 = vmatpush1.bf16.msra.mxu1 %v1289_v39 }
 0x2a8   :  { %1256 = vmatprep.subr.bf16.mxu0 %v1255_v28  ;;  %1292 = vmatprep.subr.bf16.mxu1 %v1291_v43 }
 0x2ab   :  { %1258 = vmatpush1.bf16.msra.mxu0 %v1257_v38  ;;  %1294 = vmatpush1.bf16.msra.mxu1 %v1293_v56 }
 0x2ac   :  { %1260 = vmatprep.subr.bf16.mxu0 %v1259_v40 }
 0x2ae   :  { %975 = vmatmul.mubr.f32.vlgmr.msra.gmra.mrb[0].mxu1 %v703_v57 }
 0x2af   :  { %1262 = vmatpush1.bf16.msra.mxu0 %v1261_v55  ;;  %980 = vmatprep.mubr.f32.mxu1 %v1528_v8 }
 0x2b2   :  { %862 = vmatmul.mubr.f32.vlgmr.msra.gmra.mrb[0].mxu0 %v703_v57  ;;  %981 = vmatmul.mubr.f32.gmra.mrb[2].mxu1 %v704_v58 }
 0x2b3   :  { %867 = vmatprep.mubr.f32.mxu0 %v1528_v8  ;;  %986 = vmatprep.mubr.f32.mxu1 %v1528_v8 }
 0x2b6   :  { %868 = vmatmul.mubr.f32.gmra.mrb[2].mxu0 %v704_v58  ;;  %987 = vmatmul.mubr.f32.gmra.mrb[4].mxu1 %v705_v59 }
 0x2b7   :  { %873 = vmatprep.mubr.f32.mxu0 %v1528_v8  ;;  %992 = vmatprep.mubr.f32.mxu1 %v1528_v8 }
 0x2ba   :  { %874 = vmatmul.mubr.f32.gmra.mrb[4].mxu0 %v705_v59  ;;  %993 = vmatmul.mubr.f32.gmra.mrb[6].mxu1 %v706_v60 }
 0x2bb   :  { %879 = vmatprep.mubr.f32.mxu0 %v1528_v8  ;;  %998 = vmatprep.mubr.f32.mxu1 %v1528_v8 }
 0x2be   :  { %880 = vmatmul.mubr.f32.gmra.mrb[6].mxu0 %v706_v60  ;;  %999 = vmatmul.mubr.f32.gmra.mrb[8].mxu1 %v707_v1 }
 0x2bf   :  { %885 = vmatprep.mubr.f32.mxu0 %v1528_v8  ;;  %1004 = vmatprep.mubr.f32.mxu1 %v1528_v8 }
 0x2c2   :  { %886 = vmatmul.mubr.f32.gmra.mrb[8].mxu0 %v707_v1  ;;  %1005 = vmatmul.mubr.f32.gmra.mrb[10].mxu1 %v708_v61 }
 0x2c3   :  { %891 = vmatprep.mubr.f32.mxu0 %v1528_v8  ;;  %1010 = vmatprep.mubr.f32.mxu1 %v1528_v8 }
 0x2c6   :  { %892 = vmatmul.mubr.f32.gmra.mrb[10].mxu0 %v708_v61  ;;  %1011 = vmatmul.mubr.f32.gmra.mrb[12].mxu1 %v709_v62 }
 0x2c7   :  { %897 = vmatprep.mubr.f32.mxu0 %v1528_v8  ;;  %1016 = vmatprep.mubr.f32.mxu1 %v1528_v8 }
 0x2ca   :  { %898 = vmatmul.mubr.f32.gmra.mrb[12].mxu0 %v709_v62  ;;  %1017 = vmatmul.mubr.f32.gmra.mrb[14].mxu1 %v710_v63 }
 0x2cb   :  { %903 = vmatprep.mubr.f32.mxu0 %v1528_v8  ;;  %v1774_v8 = vrot.slane %v775_v50, %v185_v49 }
 0x2ce   :  { %904 = vmatmul.mubr.f32.gmra.mrb[14].mxu0 %v710_v63 }
 0x381   :  { %v976_v4 = vpop.f32.mrb[0].mxu1 }
 0x382   :  { %v977_v45 = vadd.f32 %v976_v4, %v1766_v52  ;;  %v978_v7 = vpop.f32.mrb[1].mxu1 }
 0x383   :  { %v979_v47 = vadd.f32 %v978_v7, %v1774_v8 }
 0x384   :  { %1025 = vst [vmem:[#allocation15 + $0x10] sm:$0xff] %v977_v45 }
 0x385   :  { %v863_v2 = vpop.f32.mrb[0].mxu0  ;;  %1026 = vst [vmem:[#allocation15 + $0x18] sm:$0xff] %v979_v47  ;;  %v982_v49 = vpop.f32.mrb[2].mxu1 }
 0x386   :  { %v864_v3 = vadd.f32 %v863_v2, %v1762_v51  ;;  %v865_v5 = vpop.f32.mrb[1].mxu0  ;;  %v983_v10 = vadd.f32 %v982_v49, %v1766_v52  ;;  %v984_v12 = vpop.f32.mrb[3].mxu1 }
 0x387   :  { %v866_v6 = vadd.f32 %v865_v5, %v1770_v53  ;;  %v985_v13 = vadd.f32 %v984_v12, %v1774_v8 }
 0x388   :  { %1023 = vst [vmem:[#allocation15] sm:$0xff] %v864_v3  ;;  %1029 = vst [vmem:[#allocation15 + $0x30] sm:$0xff] %v983_v10 }
 0x389   :  { %1024 = vst [vmem:[#allocation15 + $0x8] sm:$0xff] %v866_v6  ;;  %v869_v48 = vpop.f32.mrb[2].mxu0  ;;  %1030 = vst [vmem:[#allocation15 + $0x38] sm:$0xff] %v985_v13  ;;  %v988_v16 = vpop.f32.mrb[4].mxu1 }
 0x38a   :  { %v870_v44 = vadd.f32 %v869_v48, %v1762_v51  ;;  %v871_v9 = vpop.f32.mrb[3].mxu0  ;;  %v989_v18 = vadd.f32 %v988_v16, %v1766_v52  ;;  %v990_v20 = vpop.f32.mrb[5].mxu1 }
 0x38b   :  { %v872_v11 = vadd.f32 %v871_v9, %v1770_v53  ;;  %v991_v21 = vadd.f32 %v990_v20, %v1774_v8 }
 0x38c   :  { %1027 = vst [vmem:[#allocation15 + $0x20] sm:$0xff] %v870_v44  ;;  %1033 = vst [vmem:[#allocation15 + $0x50] sm:$0xff] %v989_v18 }
 0x38d   :  { %1028 = vst [vmem:[#allocation15 + $0x28] sm:$0xff] %v872_v11  ;;  %v875_v14 = vpop.f32.mrb[4].mxu0  ;;  %1034 = vst [vmem:[#allocation15 + $0x58] sm:$0xff] %v991_v21  ;;  %v994_v24 = vpop.f32.mrb[6].mxu1 }
 0x38e   :  { %v876_v15 = vadd.f32 %v875_v14, %v1762_v51  ;;  %v877_v17 = vpop.f32.mrb[5].mxu0  ;;  %v995_v0 = vadd.f32 %v994_v24, %v1766_v52  ;;  %v996_v27 = vpop.f32.mrb[7].mxu1 }
 0x38f   :  { %v878_v19 = vadd.f32 %v877_v17, %v1770_v53  ;;  %v997_v28 = vadd.f32 %v996_v27, %v1774_v8 }
 0x390   :  { %1031 = vst [vmem:[#allocation15 + $0x40] sm:$0xff] %v876_v15  ;;  %1037 = vst [vmem:[#allocation15 + $0x70] sm:$0xff] %v995_v0 }
 0x391   :  { %1032 = vst [vmem:[#allocation15 + $0x48] sm:$0xff] %v878_v19  ;;  %v881_v22 = vpop.f32.mrb[6].mxu0  ;;  %1038 = vst [vmem:[#allocation15 + $0x78] sm:$0xff] %v997_v28  ;;  %v1000_v31 = vpop.f32.mrb[8].mxu1 }
 0x392   :  { %v882_v23 = vadd.f32 %v881_v22, %v1762_v51  ;;  %v883_v25 = vpop.f32.mrb[7].mxu0  ;;  %v1001_v33 = vadd.f32 %v1000_v31, %v1766_v52  ;;  %v1002_v35 = vpop.f32.mrb[9].mxu1 }
 0x393   :  { %v884_v26 = vadd.f32 %v883_v25, %v1770_v53  ;;  %v1003_v36 = vadd.f32 %v1002_v35, %v1774_v8 }
 0x394   :  { %1035 = vst [vmem:[#allocation15 + $0x60] sm:$0xff] %v882_v23  ;;  %1041 = vst [vmem:[#allocation15 + $0x90] sm:$0xff] %v1001_v33 }
 0x395   :  { %1036 = vst [vmem:[#allocation15 + $0x68] sm:$0xff] %v884_v26  ;;  %v887_v29 = vpop.f32.mrb[8].mxu0  ;;  %1042 = vst [vmem:[#allocation15 + $0x98] sm:$0xff] %v1003_v36  ;;  %v1006_v39 = vpop.f32.mrb[10].mxu1 }
 0x396   :  { %v888_v30 = vadd.f32 %v887_v29, %v1762_v51  ;;  %v889_v32 = vpop.f32.mrb[9].mxu0  ;;  %v1007_v41 = vadd.f32 %v1006_v39, %v1766_v52  ;;  %v1008_v43 = vpop.f32.mrb[11].mxu1 }
 0x397   :  { %v890_v34 = vadd.f32 %v889_v32, %v1770_v53  ;;  %v1009_v46 = vadd.f32 %v1008_v43, %v1774_v8 }
 0x398   :  { %1039 = vst [vmem:[#allocation15 + $0x80] sm:$0xff] %v888_v30  ;;  %1045 = vst [vmem:[#allocation15 + $0xb0] sm:$0xff] %v1007_v41 }
 0x399   :  { %1040 = vst [vmem:[#allocation15 + $0x88] sm:$0xff] %v890_v34  ;;  %v893_v37 = vpop.f32.mrb[10].mxu0  ;;  %1046 = vst [vmem:[#allocation15 + $0xb8] sm:$0xff] %v1009_v46  ;;  %v1012_v56 = vpop.f32.mrb[12].mxu1 }
 0x39a   :  { %v894_v38 = vadd.f32 %v893_v37, %v1762_v51  ;;  %v895_v40 = vpop.f32.mrb[11].mxu0  ;;  %v1013_v58 = vadd.f32 %v1012_v56, %v1766_v52  ;;  %v1014_v60 = vpop.f32.mrb[13].mxu1 }
 0x39b   :  { %v896_v42 = vadd.f32 %v895_v40, %v1770_v53  ;;  %v1015_v1 = vadd.f32 %v1014_v60, %v1774_v8 }
 0x39c   :  { %1043 = vst [vmem:[#allocation15 + $0xa0] sm:$0xff] %v894_v38  ;;  %1049 = vst [vmem:[#allocation15 + $0xd0] sm:$0xff] %v1013_v58 }
 0x39d   :  { %1044 = vst [vmem:[#allocation15 + $0xa8] sm:$0xff] %v896_v42  ;;  %v899_v54 = vpop.f32.mrb[12].mxu0  ;;  %1050 = vst [vmem:[#allocation15 + $0xd8] sm:$0xff] %v1015_v1  ;;  %v1018_v63 = vpop.f32.mrb[14].mxu1 }
 0x39e   :  { %v900_v55 = vadd.f32 %v899_v54, %v1762_v51  ;;  %v901_v57 = vpop.f32.mrb[13].mxu0  ;;  %v1019_v2 = vadd.f32 %v1018_v63, %v1766_v52  ;;  %v1020_v4 = vpop.f32.mrb[15].mxu1 }
 0x39f   :  { %v902_v59 = vadd.f32 %v901_v57, %v1770_v53  ;;  %v1021_v5 = vadd.f32 %v1020_v4, %v1774_v8 }
 0x3a0   :  { %1047 = vst [vmem:[#allocation15 + $0xc0] sm:$0xff] %v900_v55  ;;  %1053 = vst [vmem:[#allocation15 + $0xf0] sm:$0xff] %v1019_v2 }
 0x3a1   :  { %1048 = vst [vmem:[#allocation15 + $0xc8] sm:$0xff] %v902_v59  ;;  %v905_v61 = vpop.f32.mrb[14].mxu0  ;;  %1054 = vst [vmem:[#allocation15 + $0xf8] sm:$0xff] %v1021_v5 }
 0x3a2   :  { %v906_v62 = vadd.f32 %v905_v61, %v1762_v51  ;;  %v907_v50 = vpop.f32.mrb[15].mxu0 }
 0x3a3   :  { %v908_v3 = vadd.f32 %v907_v50, %v1770_v53 }
 0x3a4   :  { %1051 = vst [vmem:[#allocation15 + $0xe0] sm:$0xff] %v906_v62 }
 0x3a5   :  { %1052 = vst [vmem:[#allocation15 + $0xe8] sm:$0xff] %v908_v3 }
 0x3a6   :  { %1466 = shalt.err (!%p1463_p1)
}
 0x3a7   :  { %s1467_s24 = scalar_lea.hbm %s1830_s7, 4096 }
 0x3a8   :  { %p1468_p2 = scmp.ne.s32.totalorder %s1830_s7, %s1467_s24  ;;  %p1471_p3 = scmp.lt.u32.totalorder %s1467_s24, %s1830_s7 }
 0x3aa   :  { %p1473_p4 = pnand %p1471_p3, %p1468_p2 }
 0x3ac   :  { %1476 = shalt.err (!%p1473_p4)
}
 0x3ad   :  { %1066 = dma.vmem_to_hbm [thread:$0]  %s1061_s1, 4096, %s1830_s7, [#allocation9], %s1521_s15, %s1521_s15, %s1522_s16  }
 0x3ae   :  { %1501 = dma.done.wait [#allocation9], 4096  }
 0x3af   :  { %1502 = vsyncadd [#allocation9], 4294963200 }
 0x3b0   :  { %1070 = vsyncpa [#allocation8], 1 }
 0x3b1   :  { %1071 = vsyncpa [#allocation11], 1 }
 0x3b2   :  { %1072 = vsyncpa [#allocation14], 1 }
 0x3b3   :  { %1073 = vsyncpa [#allocation9], 1 }

</bundles_post_ra>
